<compile_context>
chip_gen: v7x
topology: tpu7x:2x2x1
jax: 0.10.0
libtpu: 0.0.40
codegen_flags: <defaults>
</compile_context>

<pallas_src>
import functools

import jax
import jax.numpy as jnp
from jax.experimental import pallas as pl
from jax.experimental.pallas import tpu as pltpu


def _round_up(v, m):
    return ((v + m - 1) // m) * m


# ----------------------------------------------------------------------------
# Kernel 1: fused embed_0 -> edge network -> NNConv (aggr='add') -> GRU.
# Grid: edge tiles (reduction axis). Scratch: embed output (+bf16 copy) + acc.
# ----------------------------------------------------------------------------
def _mp_kernel(si_ref, ea_ref, xin_ref,
               we_ref, be_ref, w1r_ref, b1r_ref,
               w2r_ref, b2r_ref,
               wrh_ref, cb_ref,
               gwi_ref, gbi_ref, gbh_ref,
               out_ref, h_scr, xb_scr, acc_scr):
    g = pl.program_id(0)
    n_nodes = h_scr.shape[0]
    hdim = h_scr.shape[1]
    ehdim = w1r_ref.shape[1] // hdim

    # --- init (first edge tile): node embedding (GRU h0) + zero accumulator ---
    @pl.when(g == 0)
    def _init():
        h = jnp.dot(xin_ref[...], we_ref[...],
                    preferred_element_type=jnp.float32) + be_ref[...]
        h = jnp.maximum(h, 0.0)
        h_scr[...] = h
        xb_scr[...] = h.astype(jnp.bfloat16)          # bf16 copy for MXU gather
        acc_scr[...] = jnp.zeros_like(acc_scr)

    # --- gather x[src] via in-register bf16 one-hot built from the index tile ---
    idx = si_ref[...]                                          # (tE, 2) int32
    src = idx[:, 0:1]                                          # (tE, 1)
    dst = idx[:, 1:2]                                          # (tE, 1)  (-1 = pad)
    node_iota = jax.lax.broadcasted_iota(
        jnp.int32, (idx.shape[0], n_nodes), 1)                 # (tE, N)
    gsel = (node_iota == src).astype(jnp.bfloat16)             # exact 0/1
    x_src = jnp.dot(gsel, xb_scr[...],
                    preferred_element_type=jnp.float32)        # (tE, H) f32

    # --- edge network + per-edge theta contraction as ONE deep-K MXU matmul ---
    # Layer-1 weights are pre-replicated host-side so that
    #   eh_rep[e, j*H + h] == ReLU(ea @ W1 + b1)[e, j]   for every h.
    eh_rep = jnp.maximum(
        jnp.dot(ea_ref[...], w1r_ref[...],
                preferred_element_type=jnp.float32) + b1r_ref[...], 0.0)   # (tE, EH*H)
    # Kronecker feature z[e, j*H + h] = eh[e, j] * x_src[e, h]  (lane concat + VPU mul)
    x_til = jnp.concatenate([x_src] * ehdim, axis=1)            # (tE, EH*H)
    z = eh_rep * x_til
    msg = (jnp.dot(z, w2r_ref[...], preferred_element_type=jnp.float32)   # K = EH*H
           + jnp.dot(x_src, b2r_ref[...],
                     preferred_element_type=jnp.float32))       # bias-of-theta term

    # --- scatter-add by dst: transposed bf16 one-hot contraction on the MXU ---
    dsel = (node_iota == dst).astype(jnp.bfloat16)              # (tE, N), pad rows = 0
    acc_scr[...] += jax.lax.dot_general(
        dsel, msg.astype(jnp.bfloat16), (((0,), (0,)), ((), ())),
        preferred_element_type=jnp.float32)                     # (N, H)

    # --- finalize (last edge tile): NNConv root/bias + GRU update, dense store ---
    @pl.when(g == pl.num_programs(0) - 1)
    def _finalize():
        h0 = h_scr[...]
        # packed 128-lane matmul: [Wroot | GRU_Wh] -> (N, 4H)
        rootgh = jnp.dot(h0, wrh_ref[...], preferred_element_type=jnp.float32)
        m = acc_scr[...] + rootgh[:, :hdim] + cb_ref[...]
        gi = jnp.dot(m, gwi_ref[...], preferred_element_type=jnp.float32) + gbi_ref[...]
        gh = rootgh[:, hdim:] + gbh_ref[...]
        r = jax.nn.sigmoid(gi[:, :hdim] + gh[:, :hdim])
        zg = jax.nn.sigmoid(gi[:, hdim:2 * hdim] + gh[:, hdim:2 * hdim])
        n = jnp.tanh(gi[:, 2 * hdim:] + r * gh[:, 2 * hdim:])
        hn = (1.0 - zg) * n + zg * h0                           # (N, H)
        pad = jnp.zeros((n_nodes, out_ref.shape[1] - hdim), jnp.float32)
        out_ref[...] = jnp.concatenate([hn, pad], axis=-1).astype(out_ref.dtype)


# ----------------------------------------------------------------------------
# Kernel 2: Set2Set readout (LSTM + masked segment softmax) fused with the MLP
# predictor head.  LSTM gate order follows torch.nn.LSTM: [i, f, g, o].
# ----------------------------------------------------------------------------
def _readout_kernel(x_ref, b_ref, wi_ref, wh_ref, bi_ref, bh_ref,
                    m1w_ref, m1b_ref, m2w_ref, m2b_ref, o_ref, *, steps):
    hdim = wh_ref.shape[0]
    b_pad = o_ref.shape[0]
    n_pad = x_ref.shape[0]

    # hoisted, loop-invariant work
    xh = x_ref[:, :hdim]                               # (N, H) logical node features
    graph_iota = jax.lax.broadcasted_iota(jnp.int32, (n_pad, b_pad), 1)
    member = graph_iota == b_ref[...]                  # (N, B) bool; padded nodes -> all False
    w_h = wi_ref[:hdim, :] + wh_ref[...]               # (H, 4H)  (h multiplies wi_q AND wh)
    wi_r = wi_ref[hdim:, :]                            # (H, 4H)  (r part of q_star input)
    bias = bi_ref[...] + bh_ref[...]                   # (1, 4H)

    def step(_, carry):
        h, c, r = carry                      # (B,H) each; q_star_{t-1} == [h, r]
        gates = (jnp.dot(h, w_h, preferred_element_type=jnp.float32)
                 + jnp.dot(r, wi_r, preferred_element_type=jnp.float32)
                 + bias)                                        # (B, 4H)
        i_g = jax.nn.sigmoid(gates[:, :hdim])
        f_g = jax.nn.sigmoid(gates[:, hdim:2 * hdim])
        g_g = jnp.tanh(gates[:, 2 * hdim:3 * hdim])
        o_g = jax.nn.sigmoid(gates[:, 3 * hdim:])
        c_new = f_g * c + i_g * g_g
        q = o_g * jnp.tanh(c_new)                               # (B, H)

        # attention logits directly in (N, B): e[n, b] = <x_n, q_b>
        e_nb = jax.lax.dot_general(xh, q, (((1,), (1,)), ((), ())),
                                   preferred_element_type=jnp.float32)     # (N, B)
        e_nb = jnp.where(member, e_nb, -1e30)
        m_b = jnp.max(e_nb, axis=0, keepdims=True)                          # (1, B)
        w_nb = jnp.where(member, jnp.exp(e_nb - m_b), 0.0)                  # (N, B)
        s_b = jnp.sum(w_nb, axis=0, keepdims=True)                          # (1, B)
        a_nb = w_nb * pl.reciprocal(jnp.maximum(s_b, 1e-20), approx=True)
        r_new = jax.lax.dot_general(
            a_nb, xh, (((0,), (0,)), ((), ())),
            preferred_element_type=jnp.float32)                             # (B, H)
        return q, c_new, r_new

    h0 = jnp.zeros((b_pad, hdim), jnp.float32)
    c0 = jnp.zeros((b_pad, hdim), jnp.float32)
    r0 = jnp.zeros((b_pad, hdim), jnp.float32)
    q, _, r = jax.lax.fori_loop(0, steps, step, (h0, c0, r0), unroll=True)

    # MLP head on q_star = [q, r] without materialising the concat
    hid = (jnp.dot(q, m1w_ref[:hdim, :], preferred_element_type=jnp.float32)
           + jnp.dot(r, m1w_ref[hdim:, :], preferred_element_type=jnp.float32)
           + m1b_ref[...])
    hid = jnp.maximum(hid, 0.0)
    y = jnp.dot(hid, m2w_ref[...], preferred_element_type=jnp.float32) + m2b_ref[...]
    o_ref[...] = y.astype(o_ref.dtype)


# ----------------------------------------------------------------------------
# Parameter init (deterministic, synthetic; PyTorch layouts transposed to (in, out)).
# ----------------------------------------------------------------------------
def init_params(key, in_feats, hidden, edge_hidden, edge_dim=1, pred_hidden=512):
    ks = jax.random.split(key, 16)

    def w(k, shape, scale=0.1):
        return scale * jax.random.normal(k, shape, jnp.float32)

    return {
        # embed_0: Linear(in_feats, hidden) + ReLU
        "embed_w": w(ks[0], (in_feats, hidden)),
        "embed_b": w(ks[1], (hidden,)),
        # edge network: Linear(edge_dim, edge_hidden) -> ReLU -> Linear(edge_hidden, H*H)
        "edge_w1": w(ks[2], (edge_dim, edge_hidden)),
        "edge_b1": w(ks[3], (edge_hidden,)),
        "edge_w2": w(ks[4], (edge_hidden, hidden * hidden), scale=0.02),
        "edge_b2": w(ks[5], (hidden * hidden,), scale=0.02),
        # NNConv root weight + bias
        "conv_root_w": w(ks[6], (hidden, hidden)),
        "conv_b": w(ks[7], (hidden,)),
        # GRU(hidden, hidden): weights transposed to (in, 3H); gate order [r, z, n]
        "gru_wi": w(ks[8], (hidden, 3 * hidden)),
        "gru_wh": w(ks[9], (hidden, 3 * hidden)),
        "gru_bi": w(ks[10], (3 * hidden,)),
        "gru_bh": w(ks[11], (3 * hidden,)),
        # Set2Set LSTM(2H -> H): weights transposed to (in, 4H); gate order [i, f, g, o]
        "s2s_wi": w(ks[12], (2 * hidden, 4 * hidden)),
        "s2s_wh": w(ks[13], (hidden, 4 * hidden)),
        "s2s_bi": w(ks[14], (4 * hidden,)),
        "s2s_bh": w(ks[15], (4 * hidden,)),
        # MLP predictor head: Linear(2H, 512) -> ReLU -> Linear(512, 1)
        # TODO(synk): MLP class source not provided; using docstring defaults
        # (predictor_hidden_feats=512, 1 hidden layer, relu, bias=False -> zero bias).
        "mlp_w1": w(jax.random.fold_in(key, 100), (2 * hidden, pred_hidden), scale=0.05),
        "mlp_b1": jnp.zeros((pred_hidden,), jnp.float32),
        "mlp_w2": w(jax.random.fold_in(key, 101), (pred_hidden, 1), scale=0.05),
        "mlp_b2": jnp.zeros((1,), jnp.float32),
    }


# ----------------------------------------------------------------------------
# Full forward glue: host-side padding / static weight reshuffles + 2 pallas_calls.
# ----------------------------------------------------------------------------
def mpnn_forward(params, x, edge_index, batch, num_graphs,
                 processing_steps=6, edge_tile=256, lane_pad=128):
    x = x.astype(jnp.float32)
    n, f = x.shape
    e = edge_index.shape[1]
    hdim = params["embed_w"].shape[1]
    ehdim = params["edge_w1"].shape[1]
    de = params["edge_w1"].shape[0]

    hp = _round_up(hdim, lane_pad)              # lane-dense node feature width
    n_pad = _round_up(n, 8)
    b_pad = _round_up(num_graphs, 8)
    de_pad = _round_up(de, 8)
    te = max(8, (int(edge_tile) // 8) * 8)      # edge tile (multiple of 8)
    e_pad = _round_up(e, te)

    # --- padding (layout plumbing only; padded edges have src=dst=-1 -> zero rows) ---
    x_p = jnp.zeros((n_pad, f), jnp.float32).at[:n].set(x)
    si = jnp.full((e_pad, 2), -1, jnp.int32)
    si = si.at[:e, 0].set(edge_index[0].astype(jnp.int32))
    si = si.at[:e, 1].set(edge_index[1].astype(jnp.int32))

    # MPNN.forward: edge_attr is None -> ones(E, 1)
    ea = jnp.ones((e, de), jnp.float32)
    ea_p = jnp.zeros((e_pad, de_pad), jnp.float32).at[:e, :de].set(ea)

    # Static weight reshuffles (host side, once):
    #   w1_rep[:, j*H + h] = W1[:, j]   (ReLU commutes with column replication)
    #   W2r[j*H + h, k]    = W2[j, h*H + k]   (matches NNConv theta.view(H_in, H_out))
    w1_p = jnp.zeros((de_pad, ehdim), jnp.float32).at[:de].set(params["edge_w1"])
    w1_rep = jnp.repeat(w1_p, hdim, axis=1)                            # (de_pad, EH*H)
    b1_rep = jnp.repeat(params["edge_b1"], hdim).reshape(1, -1)        # (1, EH*H)
    w2r = params["edge_w2"].reshape(ehdim * hdim, hdim)                # (EH*H, H)
    b2r = params["edge_b2"].reshape(hdim, hdim)                        # (H, H)
    # pack NNConv root weight with GRU hidden weight -> one 128-lane matmul in finalize
    wrh = jnp.concatenate([params["conv_root_w"], params["gru_wh"]], axis=1)  # (H, 4H)

    def e_map(g):
        return (g, 0)

    def c_map(g):
        return (0, 0)

    grid = (e_pad // te,)
    x_nodes = pl.pallas_call(
        _mp_kernel,
        out_shape=jax.ShapeDtypeStruct((n_pad, hp), jnp.float32),
        grid=grid,
        in_specs=[
            pl.BlockSpec((te, 2), e_map),                 # packed src/dst indices
            pl.BlockSpec((te, de_pad), e_map),            # edge_attr
            pl.BlockSpec((n_pad, f), c_map),              # raw node features
            pl.BlockSpec((f, hdim), c_map),               # embed W
            pl.BlockSpec((1, hdim), c_map),               # embed b
            pl.BlockSpec((de_pad, ehdim * hdim), c_map),  # edge-net W1 (replicated)
            pl.BlockSpec((1, ehdim * hdim), c_map),       # edge-net b1 (replicated)
            pl.BlockSpec((ehdim * hdim, hdim), c_map),    # edge-net W2 (Kron layout)
            pl.BlockSpec((hdim, hdim), c_map),            # edge-net b2 reshaped
            pl.BlockSpec((hdim, 4 * hdim), c_map),        # [Wroot | GRU Wh] packed
            pl.BlockSpec((1, hdim), c_map),               # conv bias
            pl.BlockSpec((hdim, 3 * hdim), c_map),        # GRU Wi
            pl.BlockSpec((1, 3 * hdim), c_map),           # GRU bi
            pl.BlockSpec((1, 3 * hdim), c_map),           # GRU bh
        ],
        out_specs=pl.BlockSpec((n_pad, hp), c_map),
        scratch_shapes=[pltpu.VMEM((n_pad, hdim), jnp.float32),    # embed / GRU h0
                        pltpu.VMEM((n_pad, hdim), jnp.bfloat16),   # bf16 copy for gather
                        pltpu.VMEM((n_pad, hdim), jnp.float32)],   # message accumulator
        compiler_params=pltpu.CompilerParams(
            dimension_semantics=("arbitrary",),
            vmem_limit_bytes=48 * 1024 * 1024),
    )(si, ea_p, x_p,
      params["embed_w"], params["embed_b"].reshape(1, -1),
      w1_rep, b1_rep, w2r, b2r,
      wrh, params["conv_b"].reshape(1, -1),
      params["gru_wi"], params["gru_bi"].reshape(1, -1),
      params["gru_bh"].reshape(1, -1))

    # Set2Set + MLP head: graph membership built in-kernel from the int32 batch
    # vector (padded nodes -> -1 -> masked out by the segment softmax).
    batch_p = jnp.full((n_pad, 1), -1, jnp.int32).at[:n, 0].set(batch.astype(jnp.int32))

    vmem = pl.BlockSpec(memory_space=pltpu.MemorySpace.VMEM)
    y_pad = pl.pallas_call(
        functools.partial(_readout_kernel, steps=processing_steps),
        out_shape=jax.ShapeDtypeStruct((b_pad, 1), jnp.float32),
        in_specs=[vmem] * 10,
        out_specs=pl.BlockSpec(memory_space=pltpu.MemorySpace.VMEM),
        compiler_params=pltpu.CompilerParams(vmem_limit_bytes=48 * 1024 * 1024),
    )(x_nodes, batch_p,
      params["s2s_wi"], params["s2s_wh"],
      params["s2s_bi"].reshape(1, -1), params["s2s_bh"].reshape(1, -1),
      params["mlp_w1"], params["mlp_b1"].reshape(1, -1),
      params["mlp_w2"], params["mlp_b2"].reshape(1, -1))

    return y_pad[:num_graphs]


if __name__ == "__main__":
    N, E, B = 16, 32, 2
    IN_FEATS, HIDDEN, EDGE_HIDDEN = 8, 32, 32

    key = jax.random.PRNGKey(0)
    k_x, k_src0, k_dst0, k_src1, k_dst1, k_p = jax.random.split(key, 6)

    x = jax.random.normal(k_x, (N, IN_FEATS), jnp.float32)

    # Two graphs: nodes [0, 8) and [8, 16); 16 edges per graph (no cross-graph edges).
    src0 = jax.random.randint(k_src0, (E // 2,), 0, N // 2)
    dst0 = jax.random.randint(k_dst0, (E // 2,), 0, N // 2)
    src1 = jax.random.randint(k_src1, (E // 2,), N // 2, N)
    dst1 = jax.random.randint(k_dst1, (E // 2,), N // 2, N)
    edge_index = jnp.stack([jnp.concatenate([src0, src1]),
                            jnp.concatenate([dst0, dst1])]).astype(jnp.int32)
    batch = jnp.concatenate([jnp.zeros(N // 2, jnp.int32),
                             jnp.ones(N - N // 2, jnp.int32)])

    params = init_params(k_p, IN_FEATS, HIDDEN, EDGE_HIDDEN)

    # edge_tile=16 -> 2 edge tiles, exercising the tiled accumulation path.
    out = mpnn_forward(params, x, edge_index, batch, num_graphs=B, edge_tile=16)
    out = jax.block_until_ready(out)
    assert out.shape == (B, 1), out.shape
    assert bool(jnp.all(jnp.isfinite(out)))
    print("KERNEL_OK")
</pallas_src>

<mosaic_0001>
module attributes {stable_mosaic.version = 11 : i64} {
  func.func @_mp_kernel(%arg0: i32, %arg1: memref<16x2xi32, #tpu.memory_space<vmem>>, %arg2: memref<16x8xf32, #tpu.memory_space<vmem>>, %arg3: memref<16x8xf32, #tpu.memory_space<vmem>>, %arg4: memref<8x32xf32, #tpu.memory_space<vmem>>, %arg5: memref<1x32xf32, #tpu.memory_space<vmem>>, %arg6: memref<8x1024xf32, #tpu.memory_space<vmem>>, %arg7: memref<1x1024xf32, #tpu.memory_space<vmem>>, %arg8: memref<1024x32xf32, #tpu.memory_space<vmem>>, %arg9: memref<32x32xf32, #tpu.memory_space<vmem>>, %arg10: memref<32x128xf32, #tpu.memory_space<vmem>>, %arg11: memref<1x32xf32, #tpu.memory_space<vmem>>, %arg12: memref<32x96xf32, #tpu.memory_space<vmem>>, %arg13: memref<1x96xf32, #tpu.memory_space<vmem>>, %arg14: memref<1x96xf32, #tpu.memory_space<vmem>>, %arg15: memref<16x128xf32, #tpu.memory_space<vmem>>, %arg16: memref<16x32xf32, #tpu.memory_space<vmem>>, %arg17: memref<16x32xbf16, #tpu.memory_space<vmem>>, %arg18: memref<16x32xf32, #tpu.memory_space<vmem>>) attributes {dimension_semantics = [#tpu.dimension_semantics<arbitrary>], iteration_bounds = array<i64: 2>, scalar_prefetch = 0 : i64, scratch_operands = 3 : i64, tpu.core_type = #tpu.core_type<tc>, window_params = [{transform_indices = @transform_0, window_bounds = array<i64: 16, 2>}, {transform_indices = @transform_1, window_bounds = array<i64: 16, 8>}, {pipeline_mode = #tpu.pipeline_mode<synchronous>, transform_indices = @transform_2, window_bounds = array<i64: 16, 8>}, {pipeline_mode = #tpu.pipeline_mode<synchronous>, transform_indices = @transform_3, window_bounds = array<i64: 8, 32>}, {pipeline_mode = #tpu.pipeline_mode<synchronous>, transform_indices = @transform_4, window_bounds = array<i64: 1, 32>}, {pipeline_mode = #tpu.pipeline_mode<synchronous>, transform_indices = @transform_5, window_bounds = array<i64: 8, 1024>}, {pipeline_mode = #tpu.pipeline_mode<synchronous>, transform_indices = @transform_6, window_bounds = array<i64: 1, 1024>}, {pipeline_mode = #tpu.pipeline_mode<synchronous>, transform_indices = @transform_7, window_bounds = array<i64: 1024, 32>}, {pipeline_mode = #tpu.pipeline_mode<synchronous>, transform_indices = @transform_8, window_bounds = array<i64: 32, 32>}, {pipeline_mode = #tpu.pipeline_mode<synchronous>, transform_indices = @transform_9, window_bounds = array<i64: 32, 128>}, {pipeline_mode = #tpu.pipeline_mode<synchronous>, transform_indices = @transform_10, window_bounds = array<i64: 1, 32>}, {pipeline_mode = #tpu.pipeline_mode<synchronous>, transform_indices = @transform_11, window_bounds = array<i64: 32, 96>}, {pipeline_mode = #tpu.pipeline_mode<synchronous>, transform_indices = @transform_12, window_bounds = array<i64: 1, 96>}, {pipeline_mode = #tpu.pipeline_mode<synchronous>, transform_indices = @transform_13, window_bounds = array<i64: 1, 96>}, {pipeline_mode = #tpu.pipeline_mode<synchronous>, transform_indices = @transform_14, window_bounds = array<i64: 16, 128>}]} {
    %c0_i32 = arith.constant 0 : i32
    %0 = arith.cmpi eq, %arg0, %c0_i32 : i32
    %1 = arith.extui %0 : i1 to i32
    %c0_i32_0 = arith.constant 0 : i32
    %2 = arith.cmpi ne, %1, %c0_i32_0 : i32
    scf.if %2 {
      %c0_24 = arith.constant 0 : index
      %c0_25 = arith.constant 0 : index
      %44 = vector.load %arg3[%c0_24, %c0_25] : memref<16x8xf32, #tpu.memory_space<vmem>>, vector<16x8xf32>
      %c0_26 = arith.constant 0 : index
      %c0_27 = arith.constant 0 : index
      %45 = vector.load %arg4[%c0_26, %c0_27] : memref<8x32xf32, #tpu.memory_space<vmem>>, vector<8x32xf32>
      %cst_28 = arith.constant dense<0.000000e+00> : vector<16x32xf32>
      %46 = tpu.matmul %44, %45, %cst_28 {dimension_numbers = #tpu.dot_dimension_numbers<[1], [0], [0], [1], [0, 0, 1, 1], [], []>} : vector<16x8xf32>, vector<8x32xf32>, vector<16x32xf32> -> vector<16x32xf32>
      %c0_29 = arith.constant 0 : index
      %c0_30 = arith.constant 0 : index
      %47 = vector.load %arg5[%c0_29, %c0_30] : memref<1x32xf32, #tpu.memory_space<vmem>>, vector<1x32xf32>
      %48 = vector.broadcast %47 : vector<1x32xf32> to vector<16x32xf32>
      %49 = arith.addf %46, %48 : vector<16x32xf32>
      %cst_31 = arith.constant 0.000000e+00 : f32
      %50 = vector.broadcast %cst_31 : f32 to vector<16x32xf32>
      %51 = arith.maximumf %49, %50 : vector<16x32xf32>
      %c0_32 = arith.constant 0 : index
      %c0_33 = arith.constant 0 : index
      %52 = vector.load %arg16[%c0_32, %c0_33] : memref<16x32xf32, #tpu.memory_space<vmem>>, vector<16x32xf32>
      tpu.vector_store %arg16[%c0_32, %c0_33], %51 {strides = array<i32>} : memref<16x32xf32, #tpu.memory_space<vmem>>, vector<16x32xf32>,
      %53 = arith.truncf %51 : vector<16x32xf32> to vector<16x32xbf16>
      %c0_34 = arith.constant 0 : index
      %c0_35 = arith.constant 0 : index
      %54 = vector.load %arg17[%c0_34, %c0_35] : memref<16x32xbf16, #tpu.memory_space<vmem>>, vector<16x32xbf16>
      tpu.vector_store %arg17[%c0_34, %c0_35], %53 {strides = array<i32>} : memref<16x32xbf16, #tpu.memory_space<vmem>>, vector<16x32xbf16>,
      %cst_36 = arith.constant 0.000000e+00 : f32
      %55 = vector.broadcast %cst_36 : f32 to vector<16x32xf32>
      %c0_37 = arith.constant 0 : index
      %c0_38 = arith.constant 0 : index
      %56 = vector.load %arg18[%c0_37, %c0_38] : memref<16x32xf32, #tpu.memory_space<vmem>>, vector<16x32xf32>
      tpu.vector_store %arg18[%c0_37, %c0_38], %55 {strides = array<i32>} : memref<16x32xf32, #tpu.memory_space<vmem>>, vector<16x32xf32>,
    } else {
    }
    %c0 = arith.constant 0 : index
    %c0_1 = arith.constant 0 : index
    %3 = vector.load %arg1[%c0, %c0_1] : memref<16x2xi32, #tpu.memory_space<vmem>>, vector<16x2xi32>
    %4 = vector.extract_strided_slice %3 {offsets = [0, 0], sizes = [16, 1], strides = [1, 1]} : vector<16x2xi32> to vector<16x1xi32>
    %5 = vector.extract_strided_slice %3 {offsets = [0, 1], sizes = [16, 1], strides = [1, 1]} : vector<16x2xi32> to vector<16x1xi32>
    %6 = tpu.iota {dimensions = array<i32: 1>} : vector<16x16xi32>
    %7 = vector.broadcast %4 : vector<16x1xi32> to vector<16x16xi32>
    %8 = arith.cmpi eq, %6, %7 : vector<16x16xi32>
    %9 = arith.extui %8 : vector<16x16xi1> to vector<16x16xi32>
    %10 = arith.sitofp %9 : vector<16x16xi32> to vector<16x16xf32>
    %11 = arith.truncf %10 : vector<16x16xf32> to vector<16x16xbf16>
    %c0_2 = arith.constant 0 : index
    %c0_3 = arith.constant 0 : index
    %12 = vector.load %arg17[%c0_2, %c0_3] : memref<16x32xbf16, #tpu.memory_space<vmem>>, vector<16x32xbf16>
    %cst = arith.constant dense<0.000000e+00> : vector<16x32xf32>
    %13 = tpu.matmul %11, %12, %cst {dimension_numbers = #tpu.dot_dimension_numbers<[1], [0], [0], [1], [0, 0, 1, 1], [], []>} : vector<16x16xbf16>, vector<16x32xbf16>, vector<16x32xf32> -> vector<16x32xf32>
    %c0_4 = arith.constant 0 : index
    %c0_5 = arith.constant 0 : index
    %14 = vector.load %arg2[%c0_4, %c0_5] : memref<16x8xf32, #tpu.memory_space<vmem>>, vector<16x8xf32>
    %c0_6 = arith.constant 0 : index
    %c0_7 = arith.constant 0 : index
    %15 = vector.load %arg6[%c0_6, %c0_7] : memref<8x1024xf32, #tpu.memory_space<vmem>>, vector<8x1024xf32>
    %cst_8 = arith.constant dense<0.000000e+00> : vector<16x1024xf32>
    %16 = tpu.matmul %14, %15, %cst_8 {dimension_numbers = #tpu.dot_dimension_numbers<[1], [0], [0], [1], [0, 0, 1, 1], [], []>} : vector<16x8xf32>, vector<8x1024xf32>, vector<16x1024xf32> -> vector<16x1024xf32>
    %c0_9 = arith.constant 0 : index
    %c0_10 = arith.constant 0 : index
    %17 = vector.load %arg7[%c0_9, %c0_10] : memref<1x1024xf32, #tpu.memory_space<vmem>>, vector<1x1024xf32>
    %18 = vector.broadcast %17 : vector<1x1024xf32> to vector<16x1024xf32>
    %19 = arith.addf %16, %18 : vector<16x1024xf32>
    %cst_11 = arith.constant 0.000000e+00 : f32
    %20 = vector.broadcast %cst_11 : f32 to vector<16x1024xf32>
    %21 = arith.maximumf %19, %20 : vector<16x1024xf32>
    %22 = tpu.concatenate %13, %13, %13, %13, %13, %13, %13, %13, %13, %13, %13, %13, %13, %13, %13, %13 in 1 : vector<16x32xf32>, vector<16x32xf32>, vector<16x32xf32>, vector<16x32xf32>, vector<16x32xf32>, vector<16x32xf32>, vector<16x32xf32>, vector<16x32xf32>, vector<16x32xf32>, vector<16x32xf32>, vector<16x32xf32>, vector<16x32xf32>, vector<16x32xf32>, vector<16x32xf32>, vector<16x32xf32>, vector<16x32xf32> -> vector<16x512xf32>
    %23 = tpu.concatenate %13, %13, %13, %13, %13, %13, %13, %13, %13, %13, %13, %13, %13, %13, %13, %13 in 1 : vector<16x32xf32>, vector<16x32xf32>, vector<16x32xf32>, vector<16x32xf32>, vector<16x32xf32>, vector<16x32xf32>, vector<16x32xf32>, vector<16x32xf32>, vector<16x32xf32>, vector<16x32xf32>, vector<16x32xf32>, vector<16x32xf32>, vector<16x32xf32>, vector<16x32xf32>, vector<16x32xf32>, vector<16x32xf32> -> vector<16x512xf32>
    %24 = tpu.concatenate %22, %23 in 1 : vector<16x512xf32>, vector<16x512xf32> -> vector<16x1024xf32>
    %25 = arith.mulf %21, %24 : vector<16x1024xf32>
    %c0_12 = arith.constant 0 : index
    %c0_13 = arith.constant 0 : index
    %26 = vector.load %arg8[%c0_12, %c0_13] : memref<1024x32xf32, #tpu.memory_space<vmem>>, vector<1024x32xf32>
    %cst_14 = arith.constant dense<0.000000e+00> : vector<16x32xf32>
    %27 = tpu.matmul %25, %26, %cst_14 {dimension_numbers = #tpu.dot_dimension_numbers<[1], [0], [0], [1], [0, 0, 1, 1], [], []>} : vector<16x1024xf32>, vector<1024x32xf32>, vector<16x32xf32> -> vector<16x32xf32>
    %c0_15 = arith.constant 0 : index
    %c0_16 = arith.constant 0 : index
    %28 = vector.load %arg9[%c0_15, %c0_16] : memref<32x32xf32, #tpu.memory_space<vmem>>, vector<32x32xf32>
    %cst_17 = arith.constant dense<0.000000e+00> : vector<16x32xf32>
    %29 = tpu.matmul %13, %28, %cst_17 {dimension_numbers = #tpu.dot_dimension_numbers<[1], [0], [0], [1], [0, 0, 1, 1], [], []>} : vector<16x32xf32>, vector<32x32xf32>, vector<16x32xf32> -> vector<16x32xf32>
    %30 = arith.addf %27, %29 : vector<16x32xf32>
    %31 = vector.broadcast %5 : vector<16x1xi32> to vector<16x16xi32>
    %32 = arith.cmpi eq, %6, %31 : vector<16x16xi32>
    %33 = arith.extui %32 : vector<16x16xi1> to vector<16x16xi32>
    %34 = arith.sitofp %33 : vector<16x16xi32> to vector<16x16xf32>
    %35 = arith.truncf %34 : vector<16x16xf32> to vector<16x16xbf16>
    %c0_18 = arith.constant 0 : index
    %c0_19 = arith.constant 0 : index
    %36 = vector.load %arg18[%c0_18, %c0_19] : memref<16x32xf32, #tpu.memory_space<vmem>>, vector<16x32xf32>
    %37 = arith.truncf %30 : vector<16x32xf32> to vector<16x32xbf16>
    %cst_20 = arith.constant dense<0.000000e+00> : vector<16x32xf32>
    %38 = tpu.matmul %35, %37, %cst_20 {dimension_numbers = #tpu.dot_dimension_numbers<[0], [0], [1], [1], [0, 1, 1, 1], [], []>} : vector<16x16xbf16>, vector<16x32xbf16>, vector<16x32xf32> -> vector<16x32xf32>
    %39 = arith.addf %36, %38 : vector<16x32xf32>
    %c0_21 = arith.constant 0 : index
    %c0_22 = arith.constant 0 : index
    %40 = vector.load %arg18[%c0_21, %c0_22] : memref<16x32xf32, #tpu.memory_space<vmem>>, vector<16x32xf32>
    tpu.vector_store %arg18[%c0_21, %c0_22], %39 {strides = array<i32>} : memref<16x32xf32, #tpu.memory_space<vmem>>, vector<16x32xf32>,
    %c1_i32 = arith.constant 1 : i32
    %41 = arith.cmpi eq, %arg0, %c1_i32 : i32
    %42 = arith.extui %41 : i1 to i32
    %c0_i32_23 = arith.constant 0 : i32
    %43 = arith.cmpi ne, %42, %c0_i32_23 : i32
    scf.if %43 {
      %c0_24 = arith.constant 0 : index
      %c0_25 = arith.constant 0 : index
      %44 = vector.load %arg16[%c0_24, %c0_25] : memref<16x32xf32, #tpu.memory_space<vmem>>, vector<16x32xf32>
      %c0_26 = arith.constant 0 : index
      %c0_27 = arith.constant 0 : index
      %45 = vector.load %arg10[%c0_26, %c0_27] : memref<32x128xf32, #tpu.memory_space<vmem>>, vector<32x128xf32>
      %cst_28 = arith.constant dense<0.000000e+00> : vector<16x128xf32>
      %46 = tpu.matmul %44, %45, %cst_28 {dimension_numbers = #tpu.dot_dimension_numbers<[1], [0], [0], [1], [0, 0, 1, 1], [], []>} : vector<16x32xf32>, vector<32x128xf32>, vector<16x128xf32> -> vector<16x128xf32>
      %c0_29 = arith.constant 0 : index
      %c0_30 = arith.constant 0 : index
      %47 = vector.load %arg18[%c0_29, %c0_30] : memref<16x32xf32, #tpu.memory_space<vmem>>, vector<16x32xf32>
      %48 = vector.extract_strided_slice %46 {offsets = [0, 0], sizes = [16, 32], strides = [1, 1]} : vector<16x128xf32> to vector<16x32xf32>
      %49 = arith.addf %47, %48 : vector<16x32xf32>
      %c0_31 = arith.constant 0 : index
      %c0_32 = arith.constant 0 : index
      %50 = vector.load %arg11[%c0_31, %c0_32] : memref<1x32xf32, #tpu.memory_space<vmem>>, vector<1x32xf32>
      %51 = vector.broadcast %50 : vector<1x32xf32> to vector<16x32xf32>
      %52 = arith.addf %49, %51 : vector<16x32xf32>
      %c0_33 = arith.constant 0 : index
      %c0_34 = arith.constant 0 : index
      %53 = vector.load %arg12[%c0_33, %c0_34] : memref<32x96xf32, #tpu.memory_space<vmem>>, vector<32x96xf32>
      %cst_35 = arith.constant dense<0.000000e+00> : vector<16x96xf32>
      %54 = tpu.matmul %52, %53, %cst_35 {dimension_numbers = #tpu.dot_dimension_numbers<[1], [0], [0], [1], [0, 0, 1, 1], [], []>} : vector<16x32xf32>, vector<32x96xf32>, vector<16x96xf32> -> vector<16x96xf32>
      %c0_36 = arith.constant 0 : index
      %c0_37 = arith.constant 0 : index
      %55 = vector.load %arg13[%c0_36, %c0_37] : memref<1x96xf32, #tpu.memory_space<vmem>>, vector<1x96xf32>
      %56 = vector.broadcast %55 : vector<1x96xf32> to vector<16x96xf32>
      %57 = arith.addf %54, %56 : vector<16x96xf32>
      %58 = vector.extract_strided_slice %46 {offsets = [0, 32], sizes = [16, 96], strides = [1, 1]} : vector<16x128xf32> to vector<16x96xf32>
      %c0_38 = arith.constant 0 : index
      %c0_39 = arith.constant 0 : index
      %59 = vector.load %arg14[%c0_38, %c0_39] : memref<1x96xf32, #tpu.memory_space<vmem>>, vector<1x96xf32>
      %60 = vector.broadcast %59 : vector<1x96xf32> to vector<16x96xf32>
      %61 = arith.addf %58, %60 : vector<16x96xf32>
      %62 = vector.extract_strided_slice %57 {offsets = [0, 0], sizes = [16, 32], strides = [1, 1]} : vector<16x96xf32> to vector<16x32xf32>
      %63 = vector.extract_strided_slice %61 {offsets = [0, 0], sizes = [16, 32], strides = [1, 1]} : vector<16x96xf32> to vector<16x32xf32>
      %64 = arith.addf %62, %63 : vector<16x32xf32>
      %65 = arith.negf %64 : vector<16x32xf32>
      %66 = math.exp %65 : vector<16x32xf32>
      %cst_40 = arith.constant 1.000000e+00 : f32
      %67 = vector.broadcast %cst_40 : f32 to vector<16x32xf32>
      %68 = arith.addf %67, %66 : vector<16x32xf32>
      %69 = arith.divf %67, %68 : vector<16x32xf32>
      %70 = vector.extract_strided_slice %57 {offsets = [0, 32], sizes = [16, 32], strides = [1, 1]} : vector<16x96xf32> to vector<16x32xf32>
      %71 = vector.extract_strided_slice %61 {offsets = [0, 32], sizes = [16, 32], strides = [1, 1]} : vector<16x96xf32> to vector<16x32xf32>
      %72 = arith.addf %70, %71 : vector<16x32xf32>
      %73 = arith.negf %72 : vector<16x32xf32>
      %74 = math.exp %73 : vector<16x32xf32>
      %cst_41 = arith.constant 1.000000e+00 : f32
      %75 = vector.broadcast %cst_41 : f32 to vector<16x32xf32>
      %76 = arith.addf %75, %74 : vector<16x32xf32>
      %77 = arith.divf %75, %76 : vector<16x32xf32>
      %78 = vector.extract_strided_slice %57 {offsets = [0, 64], sizes = [16, 32], strides = [1, 1]} : vector<16x96xf32> to vector<16x32xf32>
      %79 = vector.extract_strided_slice %61 {offsets = [0, 64], sizes = [16, 32], strides = [1, 1]} : vector<16x96xf32> to vector<16x32xf32>
      %80 = arith.mulf %69, %79 : vector<16x32xf32>
      %81 = arith.addf %78, %80 : vector<16x32xf32>
      %82 = math.tanh %81 : vector<16x32xf32>
      %cst_42 = arith.constant 1.000000e+00 : f32
      %83 = vector.broadcast %cst_42 : f32 to vector<16x32xf32>
      %84 = arith.subf %83, %77 : vector<16x32xf32>
      %85 = arith.mulf %84, %82 : vector<16x32xf32>
      %86 = arith.mulf %77, %44 : vector<16x32xf32>
      %87 = arith.addf %85, %86 : vector<16x32xf32>
      %cst_43 = arith.constant 0.000000e+00 : f32
      %88 = vector.broadcast %cst_43 : f32 to vector<16x96xf32>
      %89 = tpu.concatenate %87, %88 in 1 : vector<16x32xf32>, vector<16x96xf32> -> vector<16x128xf32>
      %c0_44 = arith.constant 0 : index
      %c0_45 = arith.constant 0 : index
      %90 = vector.load %arg15[%c0_44, %c0_45] : memref<16x128xf32, #tpu.memory_space<vmem>>, vector<16x128xf32>
      tpu.vector_store %arg15[%c0_44, %c0_45], %89 {strides = array<i32>} : memref<16x128xf32, #tpu.memory_space<vmem>>, vector<16x128xf32>,
    } else {
    }
    return
  }
  func.func @transform_0(%arg0: i32) -> (i32, i32) {
    %c0_i32 = arith.constant 0 : i32
    %c0_i32_0 = arith.constant 0 : i32
    return %arg0, %c0_i32 : i32, i32
  }
  func.func @transform_1(%arg0: i32) -> (i32, i32) {
    %c0_i32 = arith.constant 0 : i32
    %c0_i32_0 = arith.constant 0 : i32
    return %arg0, %c0_i32 : i32, i32
  }
  func.func @transform_2(%arg0: i32) -> (i32, i32) {
    %c0_i32 = arith.constant 0 : i32
    %c0_i32_0 = arith.constant 0 : i32
    %c0_i32_1 = arith.constant 0 : i32
    return %c0_i32, %c0_i32_0 : i32, i32
  }
  func.func @transform_3(%arg0: i32) -> (i32, i32) {
    %c0_i32 = arith.constant 0 : i32
    %c0_i32_0 = arith.constant 0 : i32
    %c0_i32_1 = arith.constant 0 : i32
    return %c0_i32, %c0_i32_0 : i32, i32
  }
  func.func @transform_4(%arg0: i32) -> (i32, i32) {
    %c0_i32 = arith.constant 0 : i32
    %c0_i32_0 = arith.constant 0 : i32
    %c0_i32_1 = arith.constant 0 : i32
    return %c0_i32, %c0_i32_0 : i32, i32
  }
  func.func @transform_5(%arg0: i32) -> (i32, i32) {
    %c0_i32 = arith.constant 0 : i32
    %c0_i32_0 = arith.constant 0 : i32
    %c0_i32_1 = arith.constant 0 : i32
    return %c0_i32, %c0_i32_0 : i32, i32
  }
  func.func @transform_6(%arg0: i32) -> (i32, i32) {
    %c0_i32 = arith.constant 0 : i32
    %c0_i32_0 = arith.constant 0 : i32
    %c0_i32_1 = arith.constant 0 : i32
    return %c0_i32, %c0_i32_0 : i32, i32
  }
  func.func @transform_7(%arg0: i32) -> (i32, i32) {
    %c0_i32 = arith.constant 0 : i32
    %c0_i32_0 = arith.constant 0 : i32
    %c0_i32_1 = arith.constant 0 : i32
    return %c0_i32, %c0_i32_0 : i32, i32
  }
  func.func @transform_8(%arg0: i32) -> (i32, i32) {
    %c0_i32 = arith.constant 0 : i32
    %c0_i32_0 = arith.constant 0 : i32
    %c0_i32_1 = arith.constant 0 : i32
    return %c0_i32, %c0_i32_0 : i32, i32
  }
  func.func @transform_9(%arg0: i32) -> (i32, i32) {
    %c0_i32 = arith.constant 0 : i32
    %c0_i32_0 = arith.constant 0 : i32
    %c0_i32_1 = arith.constant 0 : i32
    return %c0_i32, %c0_i32_0 : i32, i32
  }
  func.func @transform_10(%arg0: i32) -> (i32, i32) {
    %c0_i32 = arith.constant 0 : i32
    %c0_i32_0 = arith.constant 0 : i32
    %c0_i32_1 = arith.constant 0 : i32
    return %c0_i32, %c0_i32_0 : i32, i32
  }
  func.func @transform_11(%arg0: i32) -> (i32, i32) {
    %c0_i32 = arith.constant 0 : i32
    %c0_i32_0 = arith.constant 0 : i32
    %c0_i32_1 = arith.constant 0 : i32
    return %c0_i32, %c0_i32_0 : i32, i32
  }
  func.func @transform_12(%arg0: i32) -> (i32, i32) {
    %c0_i32 = arith.constant 0 : i32
    %c0_i32_0 = arith.constant 0 : i32
    %c0_i32_1 = arith.constant 0 : i32
    return %c0_i32, %c0_i32_0 : i32, i32
  }
  func.func @transform_13(%arg0: i32) -> (i32, i32) {
    %c0_i32 = arith.constant 0 : i32
    %c0_i32_0 = arith.constant 0 : i32
    %c0_i32_1 = arith.constant 0 : i32
    return %c0_i32, %c0_i32_0 : i32, i32
  }
  func.func @transform_14(%arg0: i32) -> (i32, i32) {
    %c0_i32 = arith.constant 0 : i32
    %c0_i32_0 = arith.constant 0 : i32
    %c0_i32_1 = arith.constant 0 : i32
    return %c0_i32, %c0_i32_0 : i32, i32
  }
}

</mosaic_0001>

<bundles_post_ra>
// kernel: tpu_custom_call.1
= control target key start
LH: loop header
LB: loop body
LE: loop exit
PB: predicated region body
PF: predicated region fallthrough
CT: control target
= control target key end

     0   :  { %19 = vsyncpa [#allocation6], 0  ;;  %s2602_s29 = smov 0   ;;  %s3316_s0 = inlined_call_operand.vmem [shape: s32[32,2], index: 0, kind: input, shape index: {}]   ;;  %s3317_s1 = inlined_call_operand.vmem [shape: f32[32,8], index: 1, kind: input, shape index: {}]   ;;  %s3318_s2 = inlined_call_operand.vmem [shape: f32[16,8], index: 2, kind: input, shape index: {}]   ;;  %s3319_s3 = inlined_call_operand.vmem [shape: f32[8,32], index: 3, kind: input, shape index: {}]   ;;  %s3320_s4 = inlined_call_operand.vmem [shape: f32[1,32], index: 4, kind: input, shape index: {}]   ;;  %s3321_s5 = inlined_call_operand.vmem [shape: f32[8,1024], index: 5, kind: input, shape index: {}]   ;;  %s3322_s6 = inlined_call_operand.vmem [shape: f32[1,1024], index: 6, kind: input, shape index: {}]   ;;  %s3323_s7 = inlined_call_operand.vmem [shape: f32[1024,32], index: 7, kind: input, shape index: {}]   ;;  %s3324_s8 = inlined_call_operand.vmem [shape: f32[32,32], index: 8, kind: input, shape index: {}]   ;;  %s3325_s9 = inlined_call_operand.vmem [shape: f32[32,128], index: 9, kind: input, shape index: {}]   ;;  %s3326_s10 = inlined_call_operand.vmem [shape: f32[1,32], index: 10, kind: input, shape index: {}]   ;;  %s3327_s11 = inlined_call_operand.vmem [shape: f32[32,96], index: 11, kind: input, shape index: {}]   ;;  %s3328_s12 = inlined_call_operand.vmem [shape: f32[1,96], index: 12, kind: input, shape index: {}]   ;;  %s3329_s13 = inlined_call_operand.vmem [shape: f32[1,96], index: 13, kind: input, shape index: {}]   ;;  %s3330_s14 = inlined_call_operand.hbm [shape: f32[16,128], index: 14, kind: output, shape index: {}]  }
   0x1 LB: > { %s2608_s30 = sadd.s32 4294967295, %s2511_s29   ;;  %p2012_p0 = scmp.ge.s32.totalorder %s2511_s29, 1  ;;  %s2511_s29 = sphi %s2602_s29, %s25_s29  }
   0x2   : > { %p420_p1 = scmp.lt.s32.totalorder %s2511_s29, 3 }
   0x4   : > { %p421_p2 = pnand %p2012_p0, %p420_p1 }
   0x5   : > { %s2013_s15 = sshll.u32 (!%p421_p2), %s2608_s30, 1  ;;  %p2017_p4 = scmp.ne.s32.totalorder (!%p421_p2), %s2608_s30, 0 }
   0x6   : > { %424 = sbr.rel (%p421_p2) target bundleno = 1838 (0x72e), region = 76  ;;  %p467_p3 = scmp.lt.s32.totalorder (!%p421_p2), %s2013_s15, 3 }
   0xd   : > { %s3332_s15 = smov (!%p467_p3, %s2013_s15), 3  ;;  %482 = sbr.rel (%p2017_p4) target bundleno = 237 (0xed), region = 80 }
   0xe   : > { %s2014_s16 = sshll.u32 %s3332_s15, 3  ;;  %v485_v0 = vld [vmem:[%s3319_s3] sm:$0xff] (!%p2017_p4)  ;;  %vm493_vm0 = vcmask (!%p2017_p4), 64512   ;;  %v484_v2 = vld [vmem:[%s3318_s2 + $0x8] sm:$0xff] (!%p2017_p4)  ;;  %vm577_vm1 = vcmask (!%p2017_p4), 261120   ;;  %v2513_v3 = vmov (!%p2017_p4), 0.0  }
   0xf   : > { %s2616_s19 = scalar_lea.vmem %s3316_s0, %s2014_s16  ;;  %s2621_s22 = scalar_lea.vmem %s3317_s1, %s2014_s16  ;;  %v483_v1 = vld [vmem:[%s3318_s2] sm:$0xff] (!%p2017_p4)  ;;  %2228 = vmatprep.subr.mxu0 (!%p2017_p4), %v485_v0  ;;  %582 = vst.msk [vmem:[#allocation4] sm:$0xff] (!%p2017_p4), %vm577_vm1, %v2513_v3  ;;  %583 = vst.msk [vmem:[#allocation4 + $0x8] sm:$0xff] (!%p2017_p4), %vm577_vm1, %v2513_v3 }
  0x10   : > { %2230 = vmatprep.mubr.msk.f32.mxu0 (!%p2017_p4), %vm493_vm0, %v483_v1  ;;  %2229 = vmatpush3.msra.mxu0 (!%p2017_p4), %v485_v0  ;;  %v2018_v4 = vld [vmem:[%s3320_s4] ss:$0 sm:$0xff] (!%p2017_p4) }
  0x11   : > { %2231 = vmatmul.mubr.msk.f32.vlgmr.msra.gmra.mrb[0].mxu0 (!%p2017_p4), %vm493_vm0, %v484_v2 }
  0xe4   : > { %v2232_v5 = vpop.f32.mrb[0].mxu0 }
  0xe5   : > { %v572_v6 = vadd.f32 %v2232_v5, %v2018_v4  ;;  %v566_v7 = vpop.f32.mrb[1].mxu0 }
  0xe6   : > { %v567_v8 = vadd.f32 %v2018_v4, %v566_v7 }
  0xe7   : > { %v576_v9 = vmax.f32 %v572_v6, 0.0 }
  0xe8   : > { %v575_v10 = vmax.f32 %v567_v8, 0.0 }
  0xe9   : > { %579 = vst.msk [vmem:[#allocation2 + $0x8] sm:$0xff] %vm577_vm1, %v576_v9 }
  0xea   : > { %578 = vst.msk [vmem:[#allocation2] sm:$0xff] %vm577_vm1, %v575_v10  ;;  %v580_v11 = vpack.c.bf16 %v576_v9, %v575_v10 }
  0xec   : > { %581 = vst.msk [vmem:[#allocation3] sm:$0xff] %vm577_vm1, %v580_v11 }
  0xed PF: > { %v2637_v12 = vld [vmem:[%s2616_s19] sm:$0xff]  ;;  %v2514_v13 = vmov 0   ;;  %v2515_v14 = vmov 0.0   ;;  %v2643_v15 = vld [vmem:[%s2616_s19 + $0x8] sm:$0xff]  ;;  %vm2516_vm2 = vmmov 0   ;;  %vm699_vm3 = vcmask 64512  }
  0xee   : > { %2460 = vset.pattern.permute.xlu0 %v2514_v13  ;;  %2233 = vmatprep.subr.bf16.mxu0 %v2515_v14  ;;  %v650_v17 = vld [vmem:[%s3321_s5 + $0x8] sm:$0xff]  ;;  %v649_v18 = vld [vmem:[%s3321_s5] sm:$0xff]  ;;  %v652_v20 = vld [vmem:[%s3321_s5 + $0x18] sm:$0xff]  ;;  %v586_v25 = vlaneseq  ;;  %vm602_vm6 = vcmask 130048   ;;  %vm1050_vm7 = vcmask 261120   ;;  %s2517_s26 = smov 96  }
  0xef   : > { %589 = vperm.xlu0 %2460, %v2637_v12   ;;  %776 = vmatprep.mubr.f32.mxu1 %v2515_v14  ;;  %v648_v19 = vld [vmem:[%s2621_s22 + $0x8] sm:$0xff]  ;;  %v651_v21 = vld [vmem:[%s3321_s5 + $0x10] sm:$0xff]  ;;  %v647_v22 = vld [vmem:[%s2621_s22] sm:$0xff]  ;;  %s2518_s27 = smov 32   ;;  %s2519_s19 = smov 64   ;;  %vm1053_vm8 = vcmask 523264  }
  0xf0   : > { %2235 = vmatprep.mubr.msk.bf16.mxu0 %vm2516_vm2, %v2515_v14  ;;  %2430 = vmatprep.subr.mxu1 %v650_v17  ;;  %v656_v23 = vld [vmem:[%s3321_s5 + $0x38] sm:$0xff]  ;;  %v655_v24 = vld [vmem:[%s3321_s5 + $0x30] sm:$0xff]  ;;  %v2677_v26 = vand.u32 127, %v586_v25  ;;  %v654_v32 = vld [vmem:[%s3321_s5 + $0x28] sm:$0xff]  ;;  %v2744_v57 = vshrl.u32 %v586_v25, 7  ;;  %vm1056_vm9 = vcmask 785408  }
  0xf1   : > { %2431 = vmatpush1.msra.mxu1 %v649_v18  ;;  %v1203_v33 = vld [vmem:[%s3324_s8] sm:$0xff]  ;;  %v1204_v34 = vld [vmem:[%s3324_s8 + $0x8] sm:$0xff]  ;;  %v1205_v37 = vld [vmem:[%s3324_s8 + $0x10] sm:$0xff]  ;;  %p2037_p5 = scmp.ne.s32.totalorder %s2608_s30, 1 }
  0xf2   : > { %2025 = vmatmul.mubr.msk.f32.vlgmr.msra.gmra.mrb[0].mxu1 %vm699_vm3, %v648_v19  ;;  %783 = vmatprep.subr.mxu1 %v652_v20  ;;  %v653_v35 = vld [vmem:[%s3321_s5 + $0x20] sm:$0xff]  ;;  %v2278_v36 = vpack.c.bf16 %v1204_v34, %v1203_v33  ;;  %v1206_v38 = vld [vmem:[%s3324_s8 + $0x18] sm:$0xff]  ;;  %v1092_v41 = vld [vmem:[%s3323_s7 + $0x88] sm:$0xff]  ;;  %v661_v7 = vsub.s32 0, %v2744_v57  ;;  %v665_v8 = vsub.s32 1, %v2744_v57  ;;  %v669_v9 = vsub.s32 2, %v2744_v57 }
  0xf3   : > { %592 = vperm.xlu0 %2460, %v2643_v15   ;;  %v601_v16 = vld [vmem:[#allocation3] sm:$0xff]  ;;  %784 = vmatpush1.msra.mxu1 %v651_v21  ;;  %v2282_v39 = vpack.c.bf16 %v1206_v38, %v1205_v37  ;;  %v1091_v40 = vld [vmem:[%s3323_s7 + $0x80] sm:$0xff]  ;;  %v1124_v44 = vld [vmem:[%s3323_s7 + $0x188] sm:$0xff]  ;;  %v673_v13 = vsub.s32 3, %v2744_v57  ;;  %s2522_s18 = smov (!%p2037_p5), 96  }
  0xf4   : > { %2234 = vmatpush3.bf16.msra.mxu0 %v601_v16  ;;  %847 = vmatprep.mubr.f32.mxu1 %v2515_v14  ;;  %v1123_v42 = vld [vmem:[%s3323_s7 + $0x180] sm:$0xff]  ;;  %v2286_v43 = vpack.c.bf16 %v1092_v41, %v1091_v40  ;;  %v1076_v46 = vld [vmem:[%s3323_s7 + $0x8] sm:$0xff]  ;;  %v1093_v49 = vld [vmem:[%s3323_s7 + $0x90] sm:$0xff] }
  0xf5   : > { %706 = vmatprep.subr.mxu0 %v650_v17  ;;  %937 = vmatprep.subr.mxu1 %v656_v23  ;;  %v1075_v45 = vld [vmem:[%s3323_s7] sm:$0xff]  ;;  %v2318_v47 = vpack.c.bf16 %v1124_v44, %v1123_v42  ;;  %v1094_v50 = vld [vmem:[%s3323_s7 + $0x98] sm:$0xff]  ;;  %v1077_v52 = vld [vmem:[%s3323_s7 + $0x10] sm:$0xff] }
  0xf6   : > { %2026 = vmatmul.mubr.msk.f32.vlgmr.msra.gmra.mrb[2].mxu1 %vm699_vm3, %v647_v22  ;;  %v2288_v48 = vpack.c.bf16 %v1076_v46, %v1075_v45  ;;  %v2290_v51 = vpack.c.bf16 %v1094_v50, %v1093_v49  ;;  %v1078_v53 = vld [vmem:[%s3323_s7 + $0x18] sm:$0xff]  ;;  %v1095_v55 = vld [vmem:[%s3323_s7 + $0xa0] sm:$0xff]  ;;  %v1096_v56 = vld [vmem:[%s3323_s7 + $0xa8] sm:$0xff] }
  0xf7   : > { %853 = vmatprep.mubr.f32.mxu1 %v2515_v14  ;;  %938 = vmatpush1.msra.mxu1 %v655_v24  ;;  %v2292_v54 = vpack.c.bf16 %v1078_v53, %v1077_v52  ;;  %v2294_v58 = vpack.c.bf16 %v1096_v56, %v1095_v55  ;;  %v1079_v59 = vld [vmem:[%s3323_s7 + $0x20] sm:$0xff]  ;;  %v1080_v60 = vld [vmem:[%s3323_s7 + $0x28] sm:$0xff]  ;;  %v1097_v63 = vld [vmem:[%s3323_s7 + $0xb0] sm:$0xff] }
  0xf8   : > { %2287 = vmatprep.subr.bf16.mxu1 %v2286_v43  ;;  %v2296_v62 = vpack.c.bf16 %v1080_v60, %v1079_v59  ;;  %v1098_v0 = vld [vmem:[%s3323_s7 + $0xb8] sm:$0xff]  ;;  %v1081_v3 = vld [vmem:[%s3323_s7 + $0x30] sm:$0xff]  ;;  %v1099_v6 = vld [vmem:[%s3323_s7 + $0xc0] sm:$0xff]  ;;  %v685_v43 = vsub.s32 6, %v2744_v57 }
  0xf9   : > { %v2298_v2 = vpack.c.bf16 %v1098_v0, %v1097_v63  ;;  %v1082_v4 = vld [vmem:[%s3323_s7 + $0x38] sm:$0xff]  ;;  %v1100_v11 = vld [vmem:[%s3323_s7 + $0xc8] sm:$0xff]  ;;  %v1083_v20 = vld [vmem:[%s3323_s7 + $0x40] sm:$0xff] }
  0xfa   : > { %2027 = vmatmul.mubr.msk.f32.gmra.mrb[4].mxu1 %vm699_vm3, %v648_v19  ;;  %v2300_v17 = vpack.c.bf16 %v1082_v4, %v1081_v3  ;;  %v1084_v21 = vld [vmem:[%s3323_s7 + $0x48] sm:$0xff]  ;;  %v1086_v37 = vld [vmem:[%s3323_s7 + $0x58] sm:$0xff]  ;;  %v1103_v41 = vld [vmem:[%s3323_s7 + $0xe0] sm:$0xff] }
  0xfb   : > { %1001 = vmatprep.mubr.f32.mxu1 %v2515_v14  ;;  %v1104_v42 = vld [vmem:[%s3323_s7 + $0xe8] sm:$0xff]  ;;  %v1087_v45 = vld [vmem:[%s3323_s7 + $0x60] sm:$0xff]  ;;  %v1105_v53 = vld [vmem:[%s3323_s7 + $0xf0] sm:$0xff] }
  0xfc   : > { %v2310_v44 = vpack.c.bf16 %v1104_v42, %v1103_v41  ;;  %v1088_v46 = vld [vmem:[%s3323_s7 + $0x68] sm:$0xff]  ;;  %v1090_v59 = vld [vmem:[%s3323_s7 + $0x78] sm:$0xff]  ;;  %v1155_v0 = vld [vmem:[%s3323_s7 + $0x280] sm:$0xff] }
  0xfd   : > { %v2312_v49 = vpack.c.bf16 %v1088_v46, %v1087_v45  ;;  %v1107_v4 = vld [vmem:[%s3323_s7 + $0x100] sm:$0xff] }
  0xfe   : > { %2030 = vmatmul.mubr.msk.f32.vlgmr.msra.gmra.mrb[6].mxu1 %vm699_vm3, %v647_v22 }
  0xff   : > { %1007 = vmatprep.mubr.f32.mxu1 %v2515_v14  ;;  %2289 = vmatpush3.bf16.msra.mxu1 %v2288_v48  ;;  %v689_v48 = vsub.s32 7, %v2744_v57 }
 0x100   : > { %2291 = vmatprep.subr.bf16.mxu1 %v2290_v51 }
 0x102   : > { %2031 = vmatmul.mubr.msk.f32.gmra.mrb[8].mxu1 %vm699_vm3, %v648_v19 }
 0x103   : > { %2293 = vmatpush3.bf16.msra.mxu1 %v2292_v54  ;;  %v1106_v54 = vld [vmem:[%s3323_s7 + $0xf8] sm:$0xff] }
 0x104   : > { %2295 = vmatprep.subr.bf16.mxu1 %v2294_v58  ;;  %v2314_v56 = vpack.c.bf16 %v1106_v54, %v1105_v53  ;;  %v1089_v58 = vld [vmem:[%s3323_s7 + $0x70] sm:$0xff]  ;;  %v1115_v53 = vld [vmem:[%s3323_s7 + $0x140] sm:$0xff]  ;;  %v1116_v54 = vld [vmem:[%s3323_s7 + $0x148] sm:$0xff] }
 0x107   : > { %2297 = vmatpush3.bf16.msra.mxu1 %v2296_v62 }
 0x108   : > { %2299 = vmatprep.subr.bf16.mxu1 %v2298_v2 }
 0x10b   : > { %2301 = vmatpush3.bf16.msra.mxu1 %v2300_v17 }
 0x16e   : > { %v590_v27 = vpop.permute.xlu0 %589 }
 0x16f   : > { %vm594_vm4 = vcmp.eq.s32.totalorder %v2677_v26, %v590_v27  ;;  %v1101_v27 = vld [vmem:[%s3323_s7 + $0xd0] sm:$0xff] }
 0x170   : > { %v2021_v29 = vsel %vm594_vm4, 1.0, %v2515_v14 }
 0x172   : > { %v593_v28 = vpop.permute.xlu0 %592 }
 0x173   : > { %vm595_vm5 = vcmp.eq.s32.totalorder %v2677_v26, %v593_v28  ;;  %v1102_v28 = vld [vmem:[%s3323_s7 + $0xd8] sm:$0xff] }
 0x174   : > { %v2022_v30 = vsel %vm595_vm5, 1.0, %v2515_v14  ;;  %v2306_v34 = vpack.c.bf16 %v1102_v28, %v1101_v27  ;;  %v1111_v28 = vld [vmem:[%s3323_s7 + $0x120] sm:$0xff] }
 0x175   : > { %v600_v31 = vpack.c.bf16 %v2022_v30, %v2021_v29  ;;  %v2304_v30 = vpack.c.bf16 %v1084_v21, %v1083_v20  ;;  %v1128_v20 = vld [vmem:[%s3323_s7 + $0x1a8] sm:$0xff] }
 0x177   : > { %2236 = vmatmul.mubr.msk.bf16.vlgmr.msra.gmra.mrb[0].mxu0 %vm602_vm6, %v600_v31 }
 0x178   : > { %707 = vmatpush1.msra.mxu0 %v649_v18  ;;  %770 = vmatprep.mubr.f32.mxu0 %v2515_v14 }
 0x179   : > { %860 = vmatprep.subr.mxu0 %v654_v32 }
 0x17f   : > { %2024 = vmatmul.mubr.msk.f32.vlgmr.msra.gmra.mrb[4].mxu0 %vm699_vm3, %v647_v22 }
 0x180   : > { %861 = vmatpush1.msra.mxu0 %v653_v35  ;;  %924 = vmatprep.mubr.f32.mxu0 %v2515_v14 }
 0x181   : > { %2279 = vmatprep.subr.bf16.mxu0 %v2278_v36 }
 0x183   : > { %2028 = vmatmul.mubr.msk.f32.vlgmr.msra.gmra.mrb[6].mxu0 %vm699_vm3, %v647_v22  ;;  %v2783_v22 = vld [vmem:[%s3322_s6] sm:$0xff] }
 0x184   : > { %930 = vmatprep.mubr.f32.mxu0 %v2515_v14  ;;  %2281 = vmatpush3.bf16.msra.mxu0 %v2278_v36  ;;  %v2786_v23 = vrot.slane %v2783_v22, %v661_v7  ;;  %v2789_v24 = vrot.slane %v2783_v22, %v665_v8  ;;  %v670_v25 = vrot.slane %v2783_v22, %v669_v9  ;;  %v1085_v36 = vld [vmem:[%s3323_s7 + $0x50] sm:$0xff]  ;;  %v1126_v8 = vld [vmem:[%s3323_s7 + $0x198] sm:$0xff] }
 0x185   : > { %2283 = vmatprep.subr.bf16.mxu0 %v2282_v39  ;;  %v674_v29 = vrot.slane %v2783_v22, %v673_v13  ;;  %v2308_v40 = vpack.c.bf16 %v1086_v37, %v1085_v36  ;;  %v686_v50 = vrot.slane %v2783_v22, %v685_v43  ;;  %v690_v52 = vrot.slane %v2783_v22, %v689_v48  ;;  %v1125_v7 = vld [vmem:[%s3323_s7 + $0x190] sm:$0xff]  ;;  %v1130_v36 = vld [vmem:[%s3323_s7 + $0x1b8] sm:$0xff]  ;;  %v1132_v48 = vld [vmem:[%s3323_s7 + $0x1c8] sm:$0xff] }
 0x186   : > { %v1109_v13 = vld [vmem:[%s3323_s7 + $0x110] sm:$0xff]  ;;  %v681_v37 = vsub.s32 5, %v2744_v57 }
 0x187   : > { %2029 = vmatmul.mubr.msk.f32.gmra.mrb[8].mxu0 %vm699_vm3, %v648_v19  ;;  %v2302_v19 = vpack.c.bf16 %v1100_v11, %v1099_v6  ;;  %v1113_v43 = vld [vmem:[%s3323_s7 + $0x130] sm:$0xff] }
 0x188   : > { %2285 = vmatpush3.bf16.msra.mxu0 %v2282_v39 }
 0x189   : > { %2319 = vmatprep.subr.bf16.mxu0 %v2318_v47  ;;  %2303 = vmatprep.subr.bf16.mxu1 %v2302_v19  ;;  %v1127_v19 = vld [vmem:[%s3323_s7 + $0x1a0] sm:$0xff] }
 0x18a   : > { %2305 = vmatpush3.bf16.msra.mxu1 %v2304_v30  ;;  %v2326_v27 = vpack.c.bf16 %v1128_v20, %v1127_v19  ;;  %v677_v30 = vsub.s32 4, %v2744_v57  ;;  %v1138_v19 = vld [vmem:[%s3323_s7 + $0x1f8] sm:$0xff]  ;;  %v2520_v20 = vmov 1  }
 0x18b   : > { %2307 = vmatprep.subr.bf16.mxu1 %v2306_v34  ;;  %v1129_v34 = vld [vmem:[%s3323_s7 + $0x1b0] sm:$0xff]  ;;  %2462 = vset.pattern.permute.xlu1 %v2520_v20 }
 0x18c   : > { %v2330_v42 = vpack.c.bf16 %v1130_v36, %v1129_v34  ;;  %v678_v57 = vrot.slane %v2783_v22, %v677_v30  ;;  %2461 = vset.pattern.permute.xlu0 %v2520_v20 }
 0x18e   : > { %2309 = vmatpush3.bf16.msra.mxu1 %v2308_v40 }
 0x18f   : > { %2311 = vmatprep.subr.bf16.mxu1 %v2310_v44  ;;  %v1114_v44 = vld [vmem:[%s3323_s7 + $0x138] sm:$0xff] }
 0x192   : > { %2313 = vmatpush3.bf16.msra.mxu1 %v2312_v49 }
 0x193   : > { %2315 = vmatprep.subr.bf16.mxu1 %v2314_v56 }
 0x1c5   : > { %v778_v61 = vpop.f32.mrb[0].mxu1 }
 0x1c6   : > { %v780_v1 = vpop.f32.mrb[1].mxu1  ;;  %v2800_v31 = vadd.f32 %v778_v61, %v2786_v23  ;;  %v2316_v61 = vpack.c.bf16 %v1090_v59, %v1089_v58  ;;  %v1134_v58 = vld [vmem:[%s3323_s7 + $0x1d8] sm:$0xff] }
 0x1c7   : > { %v2803_v32 = vadd.f32 %v780_v1, %v2789_v24  ;;  %v1156_v1 = vld [vmem:[%s3323_s7 + $0x288] sm:$0xff] }
 0x1c8   : > { %2317 = vmatpush3.bf16.msra.mxu1 %v2316_v61  ;;  %v2350_v2 = vpack.c.bf16 %v1156_v1, %v1155_v0  ;;  %v2336_v61 = vpack.c.bf16 %v1116_v54, %v1115_v53  ;;  %v1117_v1 = vld [vmem:[%s3323_s7 + $0x150] sm:$0xff] }
 0x1c9   : > { %v849_v5 = vpop.f32.mrb[2].mxu1 }
 0x1ca   : > { %v851_v10 = vpop.f32.mrb[3].mxu1  ;;  %v2805_v33 = vadd.f32 %v849_v5, %v670_v25  ;;  %v1108_v5 = vld [vmem:[%s3323_s7 + $0x108] sm:$0xff]  ;;  %2351 = vmatprep.subr.bf16.mxu1 %v2350_v2  ;;  %v1118_v2 = vld [vmem:[%s3323_s7 + $0x158] sm:$0xff] }
 0x1cb   : > { %v2807_v35 = vadd.f32 %v851_v10, %v674_v29  ;;  %v2320_v10 = vpack.c.bf16 %v1108_v5, %v1107_v4  ;;  %v1135_v5 = vld [vmem:[%s3323_s7 + $0x1e0] sm:$0xff] }
 0x1cc   : > { %v1016_v36 = vmax.f32 %v2805_v33, 0.0  ;;  %v1172_v33 = vld [vmem:[%s3323_s7 + $0x308] sm:$0xff] }
 0x1cd   : > { %v855_v16 = vpop.f32.mrb[4].mxu1 }
 0x1ce   : > { %v857_v18 = vpop.f32.mrb[5].mxu1  ;;  %v2815_v38 = vadd.f32 %v855_v16, %v670_v25  ;;  %v1110_v16 = vld [vmem:[%s3323_s7 + $0x118] sm:$0xff] }
 0x1cf   : > { %v2817_v39 = vadd.f32 %v857_v18, %v674_v29  ;;  %v2322_v18 = vpack.c.bf16 %v1126_v8, %v1125_v7  ;;  %v2324_v25 = vpack.c.bf16 %v1110_v16, %v1109_v13  ;;  %v1112_v29 = vld [vmem:[%s3323_s7 + $0x128] sm:$0xff]  ;;  %v1119_v13 = vld [vmem:[%s3323_s7 + $0x160] sm:$0xff] }
 0x1d0   : > { %v2328_v40 = vpack.c.bf16 %v1112_v29, %v1111_v28  ;;  %v1136_v7 = vld [vmem:[%s3323_s7 + $0x1e8] sm:$0xff]  ;;  %v1122_v28 = vld [vmem:[%s3323_s7 + $0x178] sm:$0xff]  ;;  %v1187_v29 = vld [vmem:[%s3323_s7 + $0x380] sm:$0xff] }
 0x1d1   : > { %v1003_v47 = vpop.f32.mrb[6].mxu1  ;;  %v1120_v16 = vld [vmem:[%s3323_s7 + $0x168] sm:$0xff]  ;;  %v1025_v20 = vmax.f32 %v2817_v39, 0.0 }
 0x1d2   : > { %v1005_v51 = vpop.f32.mrb[7].mxu1  ;;  %v2841_v55 = vadd.f32 %v1003_v47, %v686_v50  ;;  %v1131_v47 = vld [vmem:[%s3323_s7 + $0x1c0] sm:$0xff] }
 0x1d3   : > { %v2849_v60 = vadd.f32 %v1005_v51, %v690_v52  ;;  %v2332_v51 = vpack.c.bf16 %v1114_v44, %v1113_v43  ;;  %v1157_v43 = vld [vmem:[%s3323_s7 + $0x290] sm:$0xff] }
 0x1d5   : > { %v1009_v62 = vpop.f32.mrb[8].mxu1 }
 0x1d6   : > { %v2851_v63 = vadd.f32 %v1009_v62, %v686_v50  ;;  %v1011_v3 = vpop.f32.mrb[9].mxu1  ;;  %v682_v50 = vrot.slane %v2783_v22, %v681_v37  ;;  %v1133_v22 = vld [vmem:[%s3323_s7 + $0x1d0] sm:$0xff]  ;;  %v1139_v37 = vld [vmem:[%s3323_s7 + $0x200] sm:$0xff] }
 0x1d7   : > { %v2865_v6 = vadd.f32 %v1011_v3, %v690_v52  ;;  %v2334_v52 = vpack.c.bf16 %v1132_v48, %v1131_v47  ;;  %v2338_v0 = vpack.c.bf16 %v1134_v58, %v1133_v22  ;;  %v1189_v47 = vld [vmem:[%s3323_s7 + $0x390] sm:$0xff]  ;;  %v1190_v48 = vld [vmem:[%s3323_s7 + $0x398] sm:$0xff] }
 0x1d8   : > { %v2386_v58 = vpack.c.bf16 %v1190_v48, %v1189_v47 }
 0x24a   : > { %v2873_v9 = vpop.f32.mrb[0].mxu0 }
 0x24b   : > { %1044 = vrot.lane.b32.xlu0 %v2873_v9, %s2517_s26  ;;  %1032 = vrot.lane.b32.xlu1 %v2873_v9, %s2518_s27  ;;  %v2237_v11 = vpop.f32.mrb[1].mxu0 }
 0x24c   : > { %2247 = vmatprep.mubr.msk.f32.mxu0 %vm1050_vm7, %v2873_v9  ;;  %v2886_v17 = vpop.f32.mrb[2].mxu0  ;;  %v2342_v11 = vpack.c.bf16 %v1136_v7, %v1135_v5 }
 0x24d   : > { %v2238_v21 = vpop.f32.mrb[3].mxu0  ;;  %2248 = vmatmul.mubr.msk.f32.vlgmr.msra.gmra.mrb[10].mxu0 %vm1050_vm7, %v2886_v17 }
 0x24e   : > { %2321 = vmatpush3.bf16.msra.mxu0 %v2320_v10  ;;  %v2340_v10 = vpack.c.bf16 %v1118_v2, %v1117_v1  ;;  %v2344_v21 = vpack.c.bf16 %v1120_v16, %v1119_v13  ;;  %v1173_v1 = vld [vmem:[%s3323_s7 + $0x310] sm:$0xff]  ;;  %v1174_v2 = vld [vmem:[%s3323_s7 + $0x318] sm:$0xff]  ;;  %v1159_v13 = vld [vmem:[%s3323_s7 + $0x2a0] sm:$0xff] }
 0x24f   : > { %1038 = vrot.lane.b32.xlu1 %v2873_v9, %s2519_s19  ;;  %1040 = vrot.lane.b32.xlu0 %v2886_v17, %s2519_s19  ;;  %v1160_v16 = vld [vmem:[%s3323_s7 + $0x2a8] sm:$0xff] }
 0x250   : > { %2323 = vmatprep.subr.bf16.mxu0 %v2322_v18  ;;  %v1137_v18 = vld [vmem:[%s3323_s7 + $0x1f0] sm:$0xff] }
 0x252   : > { %2325 = vmatpush3.bf16.msra.mxu0 %v2324_v25  ;;  %v772_v41 = vpop.f32.mrb[4].mxu0  ;;  %v2346_v25 = vpack.c.bf16 %v1138_v19, %v1137_v18  ;;  %v1191_v18 = vld [vmem:[%s3323_s7 + $0x3a0] sm:$0xff]  ;;  %v1024_v19 = vmax.f32 %v2815_v38, 0.0 }
 0x253   : > { %1034 = vrot.lane.b32.xlu1 %v2886_v17, %s2518_s27  ;;  %2327 = vmatprep.subr.bf16.mxu0 %v2326_v27  ;;  %v2920_v45 = vadd.f32 %v772_v41, %v2786_v23  ;;  %v774_v46 = vpop.f32.mrb[5].mxu0  ;;  %v1121_v27 = vld [vmem:[%s3323_s7 + $0x170] sm:$0xff]  ;;  %v1017_v41 = vmax.f32 %v2807_v35, 0.0  ;;  %v1020_v35 = vmax.f32 %v2841_v55, 0.0  ;;  %v1021_v55 = vmax.f32 %v2849_v60, 0.0  ;;  %v1142_v60 = vld [vmem:[%s3323_s7 + $0x218] sm:$0xff] }
 0x254   : > { %v2930_v49 = vadd.f32 %v774_v46, %v2789_v24  ;;  %1587 = vperm.xlu0 %2461, %v2637_v12   ;;  %v1188_v12 = vld [vmem:[%s3323_s7 + $0x388] sm:$0xff]  ;;  %s2521_s27 = smov (!%p2037_p5), 32  }
 0x255   : > { %v2382_v30 = vpack.c.bf16 %v1188_v12, %v1187_v29  ;;  %v1014_v44 = vmax.f32 %v2920_v45, 0.0  ;;  %v2388_v29 = vpack.c.bf16 %v1174_v2, %v1173_v1  ;;  %v1022_v12 = vmax.f32 %v2800_v31, 0.0  ;;  %v1176_v31 = vld [vmem:[%s3323_s7 + $0x328] sm:$0xff]  ;;  %v1165_v2 = vld [vmem:[%s3323_s7 + $0x2d0] sm:$0xff] }
 0x256   : > { %2329 = vmatpush3.bf16.msra.mxu0 %v2328_v40  ;;  %v926_v23 = vpop.f32.mrb[6].mxu0  ;;  %v1140_v40 = vld [vmem:[%s3323_s7 + $0x208] sm:$0xff]  ;;  %v1015_v46 = vmax.f32 %v2930_v49, 0.0 }
 0x257   : > { %1046 = vrot.lane.b32.xlu1 %v2886_v17, %s2517_s26  ;;  %2331 = vmatprep.subr.bf16.mxu0 %v2330_v42  ;;  %v2941_v24 = vadd.f32 %v926_v23, %v678_v57  ;;  %v928_v56 = vpop.f32.mrb[7].mxu0  ;;  %v1171_v42 = vld [vmem:[%s3323_s7 + $0x300] sm:$0xff]  ;;  %v2352_v53 = vpack.c.bf16 %v1140_v40, %v1139_v37  ;;  %v1180_v1 = vld [vmem:[%s3323_s7 + $0x348] sm:$0xff]  ;;  %s2523_s26 = smov (!%p2037_p5), 64  }
 0x258   : > { %v2949_v59 = vadd.f32 %v928_v56, %v682_v50  ;;  %v2384_v56 = vpack.c.bf16 %v1172_v33, %v1171_v42 }
 0x259   : > { %v1018_v45 = vmax.f32 %v2941_v24, 0.0  ;;  %v1141_v24 = vld [vmem:[%s3323_s7 + $0x210] sm:$0xff] }
 0x25a   : > { %2333 = vmatpush3.bf16.msra.mxu0 %v2332_v51  ;;  %v932_v62 = vpop.f32.mrb[8].mxu0  ;;  %v1019_v49 = vmax.f32 %v2949_v59, 0.0 }
 0x25b   : > { %2335 = vmatprep.subr.bf16.mxu0 %v2334_v52  ;;  %v2957_v3 = vadd.f32 %v932_v62, %v678_v57  ;;  %v934_v4 = vpop.f32.mrb[9].mxu0  ;;  %1590 = vperm.xlu1 %2462, %v2643_v15   ;;  %v2348_v15 = vpack.c.bf16 %v1122_v28, %v1121_v27  ;;  %v1158_v57 = vld [vmem:[%s3323_s7 + $0x298] sm:$0xff]  ;;  %v1144_v27 = vld [vmem:[%s3323_s7 + $0x228] sm:$0xff] }
 0x25c   : > { %v2965_v8 = vadd.f32 %v934_v4, %v682_v50  ;;  %v2354_v22 = vpack.c.bf16 %v1158_v57, %v1157_v43 }
 0x25d   : > { %v1026_v38 = vmax.f32 %v2957_v3, 0.0  ;;  %v2358_v3 = vpack.c.bf16 %v1160_v16, %v1159_v13 }
 0x25e   : > { %2337 = vmatpush3.bf16.msra.mxu0 %v2336_v61  ;;  %v1027_v39 = vmax.f32 %v2965_v8, 0.0 }
 0x25f   : > { %2339 = vmatprep.subr.bf16.mxu0 %v2338_v0 }
 0x262   : > { %2341 = vmatpush3.bf16.msra.mxu0 %v2340_v10 }
 0x263   : > { %2343 = vmatprep.subr.bf16.mxu0 %v2342_v11 }
 0x266   : > { %2345 = vmatpush3.bf16.msra.mxu0 %v2344_v21  ;;  %v1192_v21 = vld [vmem:[%s3323_s7 + $0x3a8] sm:$0xff] }
 0x267   : > { %2347 = vmatprep.subr.bf16.mxu0 %v2346_v25  ;;  %v1143_v25 = vld [vmem:[%s3323_s7 + $0x220] sm:$0xff]  ;;  %v2390_v40 = vpack.c.bf16 %v1192_v21, %v1191_v18 }
 0x268   : > { %v2360_v8 = vpack.c.bf16 %v1144_v27, %v1143_v25  ;;  %v1182_v25 = vld [vmem:[%s3323_s7 + $0x358] sm:$0xff]  ;;  %v1167_v27 = vld [vmem:[%s3323_s7 + $0x2e0] sm:$0xff] }
 0x26a   : > { %2349 = vmatpush3.bf16.msra.mxu0 %v2348_v15  ;;  %v1023_v15 = vmax.f32 %v2803_v32, 0.0  ;;  %v1161_v32 = vld [vmem:[%s3323_s7 + $0x2b0] sm:$0xff] }
 0x26b   : > { %2383 = vmatprep.subr.bf16.mxu0 %v2382_v30  ;;  %v1028_v30 = vmax.f32 %v2851_v63, 0.0 }
 0x2bd   : > { %v1033_v34 = vpop.permute.xlu1 %1032  ;;  %v1045_v23 = vpop.permute.xlu0 %1044 }
 0x2be   : > { %v1051_v50 = vsel %vm1050_vm7, %v2873_v9, %v1033_v34 }
 0x2c1   : > { %v1039_v51 = vpop.permute.xlu1 %1038  ;;  %v1041_v28 = vpop.permute.xlu0 %1040 }
 0x2c2   : > { %v1054_v52 = vsel %vm1053_vm8, %v1051_v50, %v1039_v51 }
 0x2c3   : > { %v1057_v54 = vsel %vm1056_vm9, %v1054_v52, %v1045_v23 }
 0x2c4   : > { %v1060_v61 = vmul.f32 %v1057_v54, %v1015_v46  ;;  %v1062_v62 = vmul.f32 %v1057_v54, %v1017_v41  ;;  %v1059_v0 = vmul.f32 %v1057_v54, %v1014_v44  ;;  %v1061_v9 = vmul.f32 %v1057_v54, %v1016_v36  ;;  %v1175_v41 = vld [vmem:[%s3323_s7 + $0x320] sm:$0xff]  ;;  %v1162_v44 = vld [vmem:[%s3323_s7 + $0x2b8] sm:$0xff]  ;;  %v1193_v46 = vld [vmem:[%s3323_s7 + $0x3b0] sm:$0xff] }
 0x2c5   : > { %v1035_v59 = vpop.permute.xlu1 %1034  ;;  %v3041_v4 = vmul.f32 %v1057_v54, %v1019_v49  ;;  %v3043_v5 = vmul.f32 %v1057_v54, %v1021_v55  ;;  %v3045_v7 = vmul.f32 %v1057_v54, %v1018_v45  ;;  %v3047_v10 = vmul.f32 %v1057_v54, %v1020_v35  ;;  %v1194_v35 = vld [vmem:[%s3323_s7 + $0x3b8] sm:$0xff]  ;;  %v1145_v45 = vld [vmem:[%s3323_s7 + $0x230] sm:$0xff]  ;;  %v1163_v54 = vld [vmem:[%s3323_s7 + $0x2c0] sm:$0xff] }
 0x2c6   : > { %v1052_v11 = vsel %vm1050_vm7, %v2886_v17, %v1035_v59  ;;  %1350 = vmatprep.mubr.f32.mxu1 %v1060_v61  ;;  %1425 = vmatprep.mubr.f32.mxu0 %v1062_v62  ;;  %v1029_v17 = vmax.f32 %v2865_v6, 0.0  ;;  %v2356_v6 = vpack.c.bf16 %v1142_v60, %v1141_v24  ;;  %v2392_v50 = vpack.c.bf16 %v1176_v31, %v1175_v41  ;;  %v1146_v49 = vld [vmem:[%s3323_s7 + $0x238] sm:$0xff]  ;;  %v1177_v55 = vld [vmem:[%s3323_s7 + $0x330] sm:$0xff]  ;;  %v1148_v24 = vld [vmem:[%s3323_s7 + $0x248] sm:$0xff] }
 0x2c7   : > { %1351 = vmatmul.mubr.f32.vlgmr.msra.gmra.mrb[10].mxu1 %v1059_v0  ;;  %1426 = vmatmul.mubr.f32.vlgmr.msra.gmra.mrb[12].mxu0 %v1061_v9  ;;  %v1055_v34 = vsel %vm1053_vm8, %v1052_v11, %v1041_v28  ;;  %v2362_v23 = vpack.c.bf16 %v1162_v44, %v1161_v32  ;;  %v2394_v52 = vpack.c.bf16 %v1194_v35, %v1193_v46  ;;  %v1147_v9 = vld [vmem:[%s3323_s7 + $0x240] sm:$0xff]  ;;  %v1198_v11 = vld [vmem:[%s3323_s7 + $0x3d8] sm:$0xff]  ;;  %v1168_v28 = vld [vmem:[%s3323_s7 + $0x2e8] sm:$0xff] }
 0x2c8   : > { %2353 = vmatpush3.bf16.msra.mxu1 %v2352_v53  ;;  %2385 = vmatpush3.bf16.msra.mxu0 %v2384_v56  ;;  %v1178_v53 = vld [vmem:[%s3323_s7 + $0x338] sm:$0xff]  ;;  %v1164_v56 = vld [vmem:[%s3323_s7 + $0x2c8] sm:$0xff]  ;;  %v2364_v61 = vpack.c.bf16 %v1146_v49, %v1145_v45  ;;  %v1179_v59 = vld [vmem:[%s3323_s7 + $0x340] sm:$0xff]  ;;  %v2368_v13 = vpack.c.bf16 %v1148_v24, %v1147_v9 }
 0x2c9   : > { %v1047_v36 = vpop.permute.xlu1 %1046  ;;  %2355 = vmatprep.subr.bf16.mxu1 %v2354_v22  ;;  %2387 = vmatprep.subr.bf16.mxu0 %v2386_v58  ;;  %v1195_v22 = vld [vmem:[%s3323_s7 + $0x3c0] sm:$0xff]  ;;  %v1196_v58 = vld [vmem:[%s3323_s7 + $0x3c8] sm:$0xff]  ;;  %v2396_v62 = vpack.c.bf16 %v1178_v53, %v1177_v55  ;;  %v2366_v0 = vpack.c.bf16 %v1164_v56, %v1163_v54  ;;  %v2400_v16 = vpack.c.bf16 %v1180_v1, %v1179_v59  ;;  %v1202_v41 = vld [vmem:[%s3323_s7 + $0x3f8] sm:$0xff] }
 0x2ca   : > { %v1058_v37 = vsel %vm1056_vm9, %v1055_v34, %v1047_v36  ;;  %v2398_v60 = vpack.c.bf16 %v1196_v58, %v1195_v22  ;;  %v1183_v34 = vld [vmem:[%s3323_s7 + $0x360] sm:$0xff]  ;;  %v1185_v44 = vld [vmem:[%s3323_s7 + $0x370] sm:$0xff]  ;;  %v1186_v46 = vld [vmem:[%s3323_s7 + $0x378] sm:$0xff] }
 0x2cb   : > { %v1068_v63 = vmul.f32 %v1058_v37, %v1023_v15  ;;  %v1070_v42 = vmul.f32 %v1058_v37, %v1025_v20  ;;  %v1067_v33 = vmul.f32 %v1058_v37, %v1022_v12  ;;  %v1069_v43 = vmul.f32 %v1058_v37, %v1024_v19  ;;  %v1149_v19 = vld [vmem:[%s3323_s7 + $0x250] sm:$0xff]  ;;  %v1150_v20 = vld [vmem:[%s3323_s7 + $0x258] sm:$0xff]  ;;  %v1151_v15 = vld [vmem:[%s3323_s7 + $0x260] sm:$0xff] }
 0x2cc   : > { %2357 = vmatpush3.bf16.msra.mxu1 %v2356_v6  ;;  %2389 = vmatpush3.bf16.msra.mxu0 %v2388_v29  ;;  %v3097_v57 = vmul.f32 %v1058_v37, %v1027_v39  ;;  %v3099_v47 = vmul.f32 %v1058_v37, %v1029_v17  ;;  %v3101_v48 = vmul.f32 %v1058_v37, %v1026_v38  ;;  %v1181_v17 = vld [vmem:[%s3323_s7 + $0x350] sm:$0xff]  ;;  %v1199_v38 = vld [vmem:[%s3323_s7 + $0x3e0] sm:$0xff]  ;;  %v1200_v39 = vld [vmem:[%s3323_s7 + $0x3e8] sm:$0xff] }
 0x2cd   : > { %1355 = vmatprep.mubr.f32.mxu1 %v1068_v63  ;;  %1430 = vmatprep.mubr.f32.mxu0 %v1070_v42  ;;  %v3112_v51 = vmul.f32 %v1058_v37, %v1028_v30  ;;  %v2372_v6 = vpack.c.bf16 %v1150_v20, %v1149_v19  ;;  %v2404_v29 = vpack.c.bf16 %v1182_v25, %v1181_v17  ;;  %v1152_v30 = vld [vmem:[%s3323_s7 + $0x268] sm:$0xff]  ;;  %v1153_v42 = vld [vmem:[%s3323_s7 + $0x270] sm:$0xff] }
 0x2ce   : > { %1356 = vmatmul.mubr.f32.gmra.mrb[12].mxu1 %v1067_v33  ;;  %1431 = vmatmul.mubr.f32.gmra.mrb[14].mxu0 %v1069_v43  ;;  %v2374_v12 = vpack.c.bf16 %v1168_v28, %v1167_v27  ;;  %v2406_v36 = vpack.c.bf16 %v1200_v39, %v1199_v38  ;;  %v1184_v37 = vld [vmem:[%s3323_s7 + $0x368] sm:$0xff]  ;;  %v2376_v31 = vpack.c.bf16 %v1152_v30, %v1151_v15  ;;  %v1154_v33 = vld [vmem:[%s3323_s7 + $0x278] sm:$0xff] }
 0x2cf   : > { %2359 = vmatprep.subr.bf16.mxu1 %v2358_v3  ;;  %2391 = vmatprep.subr.bf16.mxu0 %v2390_v40  ;;  %v1169_v3 = vld [vmem:[%s3323_s7 + $0x2f0] sm:$0xff]  ;;  %v1170_v40 = vld [vmem:[%s3323_s7 + $0x2f8] sm:$0xff]  ;;  %v2408_v32 = vpack.c.bf16 %v1184_v37, %v1183_v34  ;;  %v2380_v35 = vpack.c.bf16 %v1154_v33, %v1153_v42  ;;  %v2412_v49 = vpack.c.bf16 %v1186_v46, %v1185_v44  ;;  %v1672_v37 = vld [vmem:[%s3325_s9] sm:$0xff] (!%p2037_p5) }
 0x2d0   : > { %2361 = vmatpush3.bf16.msra.mxu1 %v2360_v8  ;;  %1500 = vmatprep.mubr.f32.mxu1 %v3041_v4  ;;  %v1166_v4 = vld [vmem:[%s3323_s7 + $0x2d8] sm:$0xff]  ;;  %v1201_v8 = vld [vmem:[%s3323_s7 + $0x3f0] sm:$0xff]  ;;  %v2378_v63 = vpack.c.bf16 %v1170_v40, %v1169_v3  ;;  %v1673_v3 = vld [vmem:[%s3325_s9 + $0x8] sm:$0xff] (!%p2037_p5) }
 0x2d1   : > { %2393 = vmatpush3.bf16.msra.mxu0 %v2392_v50  ;;  %1575 = vmatprep.mubr.f32.mxu0 %v3043_v5  ;;  %v1197_v5 = vld [vmem:[%s3323_s7 + $0x3d0] sm:$0xff]  ;;  %v2370_v18 = vpack.c.bf16 %v1166_v4, %v1165_v2  ;;  %v2410_v43 = vpack.c.bf16 %v1202_v41, %v1201_v8  ;;  %v1599_v39 = vld [vmem:[#allocation4] sm:$0xff]  ;;  %v2414_v8 = vpack.c.bf16 (!%p2037_p5), %v1673_v3, %v1672_v37  ;;  %v1770_v42 = vld [vmem:[%s3327_s11] sm:$0xff] (!%p2037_p5) }
 0x2d2   : > { %2363 = vmatprep.subr.bf16.mxu1 %v2362_v23  ;;  %2395 = vmatprep.subr.bf16.mxu0 %v2394_v52  ;;  %v2402_v21 = vpack.c.bf16 %v1198_v11, %v1197_v5  ;;  %v1674_v40 = vld [vmem:[%s3325_s9 + $0x10] sm:$0xff] (!%p2037_p5)  ;;  %v1675_v41 = vld [vmem:[%s3325_s9 + $0x18] sm:$0xff] (!%p2037_p5)  ;;  %v1771_v33 = vld [vmem:[%s3327_s11 + $0x8] sm:$0xff] (!%p2037_p5) }
 0x2d3   : > { %v1588_v50 = vpop.permute.xlu0 %1587  ;;  %v3258_v44 = vld [vmem:[#allocation2 + $0x8] sm:$0xff] (!%p2037_p5)  ;;  %v1772_v46 = vld [vmem:[%s3327_s11 + $0x10] sm:$0xff] (!%p2037_p5) }
 0x2d4   : > { %2365 = vmatpush3.bf16.msra.mxu1 %v2364_v61  ;;  %vm1592_vm10 = vcmp.eq.s32.totalorder %v2677_v26, %v1588_v50 }
 0x2d5   : > { %2397 = vmatpush3.bf16.msra.mxu0 %v2396_v62  ;;  %2367 = vmatprep.subr.bf16.mxu1 %v2366_v0  ;;  %v2034_v55 = vsel %vm1592_vm10, 1.0, %v2515_v14 }
 0x2d6   : > { %2399 = vmatprep.subr.bf16.mxu0 %v2398_v60 }
 0x2d8   : > { %2369 = vmatpush3.bf16.msra.mxu1 %v2368_v13 }
 0x2d9   : > { %2401 = vmatpush3.bf16.msra.mxu0 %v2400_v16  ;;  %2371 = vmatprep.subr.bf16.mxu1 %v2370_v18 }
 0x2da   : > { %2403 = vmatprep.subr.bf16.mxu0 %v2402_v21  ;;  %v1591_v45 = vpop.permute.xlu1 %1590 }
 0x2db   : > { %vm1593_vm11 = vcmp.eq.s32.totalorder %v2677_v26, %v1591_v45 }
 0x2dc   : > { %2373 = vmatpush3.bf16.msra.mxu1 %v2372_v6  ;;  %v2035_v23 = vsel %vm1593_vm11, 1.0, %v2515_v14 }
 0x2dd   : > { %2405 = vmatpush3.bf16.msra.mxu0 %v2404_v29  ;;  %2375 = vmatprep.subr.bf16.mxu1 %v2374_v12  ;;  %v1598_v52 = vpack.c.bf16 %v2035_v23, %v2034_v55  ;;  %v1600_v29 = vld [vmem:[#allocation4 + $0x8] sm:$0xff] }
 0x2de   : > { %2407 = vmatprep.subr.bf16.mxu0 %v2406_v36 }
 0x2df   : > { %1602 = vxpose.xlu1.c.b16.start.end [1/1] (short) (narrow) %v1598_v52, 16 }
 0x2e0   : > { %2377 = vmatpush3.bf16.msra.mxu1 %v2376_v31  ;;  %v3244_v31 = vld [vmem:[#allocation2] sm:$0xff] (!%p2037_p5) }
 0x2e1   : > { %2409 = vmatpush3.bf16.msra.mxu0 %v2408_v32  ;;  %2379 = vmatprep.subr.bf16.mxu1 %v2378_v63  ;;  %v2418_v32 = vpack.c.bf16 (!%p2037_p5), %v1675_v41, %v1674_v40  ;;  %v2044_v63 = vld [vmem:[%s3329_s13] ss:$0 sm:$0xff] (!%p2037_p5) }
 0x2e2   : > { %2411 = vmatprep.subr.bf16.mxu0 %v2410_v43  ;;  %1868 = vrot.lane.b32.xlu0 (!%p2037_p5), %v2044_v63, %s2521_s27  ;;  %v2422_v43 = vpack.c.bf16 (!%p2037_p5), %v1771_v33, %v1770_v42 }
 0x2e4   : > { %2381 = vmatpush3.bf16.msra.mxu1 %v2380_v35  ;;  %v1773_v35 = vld [vmem:[%s3327_s11 + $0x18] sm:$0xff] (!%p2037_p5) }
 0x2e5   : > { %2413 = vmatpush3.bf16.msra.mxu0 %v2412_v49  ;;  %2250 = vmatprep.subr.bf16.mxu1 %v2515_v14  ;;  %v2426_v50 = vpack.c.bf16 (!%p2037_p5), %v1773_v35, %v1772_v46 }
 0x2e6   : > { %2415 = vmatprep.subr.bf16.mxu0 (!%p2037_p5), %v2414_v8 }
 0x2e7   : > { %1501 = vmatmul.mubr.f32.vlgmr.msra.gmra.mrb[14].mxu1 %v3045_v7 }
 0x2e8   : > { %1576 = vmatmul.mubr.f32.vlgmr.msra.gmra.mrb[16].mxu0 %v3047_v10  ;;  %1505 = vmatprep.mubr.f32.mxu1 %v3097_v57 }
 0x2e9   : > { %1580 = vmatprep.mubr.f32.mxu0 %v3099_v47  ;;  %2417 = vmatpush3.bf16.msra.mxu0 (!%p2037_p5), %v2414_v8 }
 0x2ea   : > { %2419 = vmatprep.subr.bf16.mxu0 (!%p2037_p5), %v2418_v32 }
 0x2eb   : > { %1506 = vmatmul.mubr.f32.gmra.mrb[16].mxu1 %v3101_v48 }
 0x2ec   : > { %1581 = vmatmul.mubr.f32.gmra.mrb[18].mxu0 %v3112_v51  ;;  %2252 = vmatprep.mubr.msk.bf16.mxu1 %vm2516_vm2, %v2515_v14 }
 0x2ed   : > { %2264 = vmatprep.mubr.msk.f32.mxu0 (!%p2037_p5), %vm1050_vm7, %v3244_v31  ;;  %2421 = vmatpush3.bf16.msra.mxu0 (!%p2037_p5), %v2418_v32 }
 0x2f0   : > { %2265 = vmatmul.mubr.msk.f32.vlgmr.msra.gmra.mrb[0].mxu0 (!%p2037_p5), %vm1050_vm7, %v3258_v44 }
 0x320   : > { %v2249_v26 = vpop.f32.mrb[10].mxu0 }
 0x321   : > { %v1277_v53 = vpop.f32.mrb[11].mxu0 }
 0x345   : > { %v1610_v38 = vpop.trf.xlu1 }
 0x354   : > { %v1869_v45 = vpop.permute.xlu0 (!%p2037_p5), %1868 }
 0x39a   : > { %v2094_v54 = vpop.f32.mrb[10].mxu1  ;;  %v2132_v56 = vpop.f32.mrb[12].mxu0 }
 0x39b   : > { %v2095_v22 = vpop.f32.mrb[11].mxu1  ;;  %v2133_v58 = vpop.f32.mrb[13].mxu0 }
 0x39c   : > { %v2096_v7 = vadd.f32 %v2095_v22, %v2094_v54  ;;  %v2134_v61 = vadd.f32 %v2133_v58, %v2132_v56  ;;  %v2040_v54 = vld [vmem:[%s3326_s10] ss:$0 sm:$0xff] (!%p2037_p5) }
 0x39e   : > { %v1353_v10 = vadd.f32 %v2096_v7, %v1277_v53 }
 0x3a0   : > { %v1428_v62 = vadd.f32 %v2134_v61, %v1353_v10  ;;  %v2041_v61 = vld [vmem:[%s3328_s12] ss:$0 sm:$0xff] (!%p2037_p5) }
 0x3a1   : > { %v2097_v57 = vpop.f32.mrb[12].mxu1  ;;  %v2135_v0 = vpop.f32.mrb[14].mxu0 }
 0x3a2   : > { %v2098_v47 = vpop.f32.mrb[13].mxu1  ;;  %v2136_v9 = vpop.f32.mrb[15].mxu0 }
 0x3a3   : > { %v2099_v48 = vadd.f32 %v2098_v47, %v2097_v57  ;;  %v2137_v24 = vadd.f32 %v2136_v9, %v2135_v0 }
 0x3a5   : > { %v1358_v51 = vadd.f32 %v2249_v26, %v2099_v48 }
 0x3a7   : > { %v1433_v59 = vadd.f32 %v2137_v24, %v1358_v51 }
 0x3ba   : > { %v2170_v60 = vpop.f32.mrb[14].mxu1 }
 0x3bb   : > { %v2208_v14 = vpop.f32.mrb[16].mxu0  ;;  %v2171_v1 = vpop.f32.mrb[15].mxu1 }
 0x3bc   : > { %v2172_v2 = vadd.f32 %v2171_v1, %v2170_v60  ;;  %v2209_v4 = vpop.f32.mrb[17].mxu0 }
 0x3bd   : > { %v2210_v5 = vadd.f32 %v2209_v4, %v2208_v14 }
 0x3be   : > { %v1503_v11 = vadd.f32 %v2172_v2, %v1428_v62  ;;  %v2173_v13 = vpop.f32.mrb[16].mxu1 }
 0x3bf   : > { %v2211_v16 = vpop.f32.mrb[18].mxu0  ;;  %v2174_v18 = vpop.f32.mrb[17].mxu1 }
 0x3c0   : > { %v1578_v19 = vadd.f32 %v2210_v5, %v1503_v11  ;;  %v2175_v20 = vadd.f32 %v2174_v18, %v2173_v13  ;;  %v2212_v17 = vpop.f32.mrb[19].mxu0 }
 0x3c1   : > { %v2213_v21 = vadd.f32 %v2212_v17, %v2211_v16 }
 0x3c2   : > { %v1508_v25 = vadd.f32 %v2175_v20, %v1433_v59 }
 0x3c3   : > { %v2266_v23 = vpop.f32.mrb[0].mxu0 (!%p2037_p5) }
 0x3c4   : > { %v1583_v27 = vadd.f32 %v2213_v21, %v1508_v25  ;;  %v1748_v26 = vpop.f32.mrb[1].mxu0 (!%p2037_p5)  ;;  %v1872_v53 = vadd.f32 (!%p2037_p5), %v2266_v23, %v1869_v45 }
 0x3c5   : > { %v1871_v22 = vadd.f32 (!%p2037_p5), %v1869_v45, %v1748_v26 }
 0x3c6   : > { %v1601_v28 = vpack.c.bf16 %v1583_v27, %v1578_v19  ;;  %1877 = vrot.lane.b32.xlu1 (!%p2037_p5), %v1872_v53, %s2522_s18 }
 0x3c7   : > { %1875 = vrot.lane.b32.xlu0 (!%p2037_p5), %v1871_v22, %s2522_s18 }
 0x3c8   : > { %2251 = vmatpush3.bf16.msra.mxu1 %v1601_v28 }
 0x3c9   : > { %2423 = vmatprep.subr.bf16.mxu1 (!%p2037_p5), %v2422_v43 }
 0x3ca   : > { %1895 = vrot.lane.b32.xlu1 (!%p2037_p5), %v1871_v22, %s2521_s27 }
 0x3cb   : > { %2253 = vmatmul.mubr.msk.bf16.vlgmr.msra.gmra.mrb[20].mxu1 %vm602_vm6, %v1610_v38  ;;  %1897 = vrot.lane.b32.xlu0 (!%p2037_p5), %v1872_v53, %s2521_s27 }
 0x3cc   : > { %2425 = vmatpush3.bf16.msra.mxu1 (!%p2037_p5), %v2422_v43 }
 0x3cd   : > { %2427 = vmatprep.subr.bf16.mxu1 (!%p2037_p5), %v2426_v50 }
 0x3d0   : > { %2429 = vmatpush3.bf16.msra.mxu1 (!%p2037_p5), %v2426_v50 }
 0x438   : > { %v1878_v0 = vpop.permute.xlu1 (!%p2037_p5), %1877 }
 0x439   : > { %v1876_v9 = vpop.permute.xlu0 (!%p2037_p5), %1875 }
 0x43c   : > { %v1896_v13 = vpop.permute.xlu1 (!%p2037_p5), %1895 }
 0x43d   : > { %v1898_v5 = vpop.permute.xlu0 (!%p2037_p5), %1897 }
 0x49d   : > { %1669 = sbr.rel (%p2037_p5) target bundleno = 1812 (0x714), region = 84 }
 0x49e   : > { %v1655_v6 = vpop.f32.mrb[20].mxu1 }
 0x49f   : > { %v1662_v12 = vadd.f32 %v1655_v6, %v1599_v39  ;;  %v2254_v15 = vpop.f32.mrb[21].mxu1 }
 0x4a0   : > { %v1658_v30 = vpop.f32.mrb[22].mxu1 }
 0x4a1   : > { %1664 = vst.msk [vmem:[#allocation4] sm:$0xff] %vm1050_vm7, %v1662_v12  ;;  %v1663_v34 = vadd.f32 %v1658_v30, %v1600_v29  ;;  %v2255_v36 = vpop.f32.mrb[23].mxu1 }
 0x4a3   : > { %1665 = vst.msk [vmem:[#allocation4 + $0x8] sm:$0xff] %vm1050_vm7, %v1663_v34 }
 0x4a8   : > { %v1757_v55 = vld [vmem:[#allocation4] sm:$0xff] }
 0x4a9   : > { %v1759_v56 = vadd.f32 %v1757_v55, %v1748_v26 }
 0x4aa   : > { %v1758_v49 = vld [vmem:[#allocation4 + $0x8] sm:$0xff] }
 0x4ab   : > { %v1760_v52 = vadd.f32 %v2266_v23, %v1758_v49  ;;  %v1768_v58 = vadd.f32 %v2040_v54, %v1759_v56 }
 0x4ad   : > { %v1769_v7 = vadd.f32 %v2040_v54, %v1760_v52  ;;  %2275 = vmatprep.mubr.msk.f32.mxu1 %vm1050_vm7, %v1768_v58 }
 0x4af   : > { %2276 = vmatmul.mubr.msk.f32.vlgmr.msra.gmra.mrb[0].mxu1 %vm1050_vm7, %v1769_v7 }
 0x582   : > { %v2277_v10 = vpop.f32.mrb[0].mxu1 }
 0x583   : > { %v1859_v62 = vadd.f32 %v2277_v10, %v2041_v61  ;;  %v1853_v57 = vpop.f32.mrb[1].mxu1 }
 0x584   : > { %v1854_v47 = vadd.f32 %v2041_v61, %v1853_v57 }
 0x585   : > { %v1882_v48 = vadd.f32 %v1878_v0, %v1859_v62 }
 0x586   : > { %v1881_v24 = vadd.f32 %v1876_v9, %v1854_v47 }
 0x587   : > { %v2046_v51 = vmul.f32 -1.442695, %v1882_v48 }
 0x588   : > { %v2045_v59 = vmul.f32 -1.442695, %v1881_v24 }
 0x589   : > { %2463 = vpow2.f32 %v2046_v51 }
 0x58a   : > { %2465 = vpow2.f32 %v2045_v59 }
 0x593   : > { %v2464_v60 = vpop.eup %2463 }
 0x594   : > { %v2466_v14 = vpop.eup %2465  ;;  %v1890_v1 = vadd.f32 1.0, %v2464_v60 }
 0x595   : > { %v1889_v2 = vadd.f32 1.0, %v2466_v14 }
 0x596   : > { %2467 = vrcp.f32 %v1890_v1 }
 0x597   : > { %2469 = vrcp.f32 %v1889_v2 }
 0x5a0   : > { %v2468_v4 = vpop.eup %2467 }
 0x5a1   : > { %v2470_v11 = vpop.eup %2469  ;;  %v1902_v16 = vmul.f32 %v2468_v4, %v1898_v5  ;;  %v1916_v39 = vsub.f32 1.0, %v2468_v4 }
 0x5a2   : > { %v1901_v18 = vmul.f32 %v2470_v11, %v1896_v13  ;;  %v1915_v6 = vsub.f32 1.0, %v2470_v11 }
 0x5a3   : > { %1907 = vrot.lane.b32.xlu0 %v1902_v16, %s2523_s26 }
 0x5a4   : > { %1905 = vrot.lane.b32.xlu1 %v1901_v18, %s2523_s26 }
 0x615   : > { %v1908_v19 = vpop.permute.xlu0 %1907 }
 0x616   : > { %v1912_v20 = vadd.f32 %v1908_v19, %v1859_v62  ;;  %v1906_v17 = vpop.permute.xlu1 %1905 }
 0x617   : > { %v1911_v21 = vadd.f32 %v1906_v17, %v1854_v47 }
 0x618   : > { %2471 = vtanh.f32 %v1912_v20 }
 0x619   : > { %2473 = vtanh.f32 %v1911_v21 }
 0x622   : > { %v2472_v25 = vpop.eup %2471 }
 0x623   : > { %v2474_v27 = vpop.eup %2473  ;;  %1921 = vrot.lane.b32.xlu0 %v2472_v25, %s2522_s18 }
 0x624   : > { %1919 = vrot.lane.b32.xlu1 %v2474_v27, %s2522_s18 }
 0x627   : > { %1929 = vrot.lane.b32.xlu0 %v3258_v44, %s2521_s27 }
 0x628   : > { %1927 = vrot.lane.b32.xlu1 %v3244_v31, %s2521_s27 }
 0x695   : > { %v1922_v28 = vpop.permute.xlu0 %1921 }
 0x696   : > { %v1920_v38 = vpop.permute.xlu1 %1919  ;;  %v1926_v12 = vmul.f32 %v1922_v28, %v1916_v39 }
 0x697   : > { %v1925_v34 = vmul.f32 %v1920_v38, %v1915_v6 }
 0x699   : > { %v1930_v29 = vpop.permute.xlu0 %1929 }
 0x69a   : > { %v1934_v15 = vmul.f32 %v2468_v4, %v1930_v29  ;;  %v1928_v30 = vpop.permute.xlu1 %1927 }
 0x69b   : > { %v1933_v36 = vmul.f32 %v2470_v11, %v1928_v30 }
 0x69c   : > { %v1936_v37 = vadd.f32 %v1934_v15, %v1926_v12 }
 0x69d   : > { %v1935_v3 = vadd.f32 %v1933_v36, %v1925_v34 }
 0x69e   : > { %1941 = vrot.lane.b32.xlu0 %v1936_v37, %s2522_s18 }
 0x69f   : > { %1939 = vrot.lane.b32.xlu1 %v1935_v3, %s2522_s18 }
 0x710   : > { %v1942_v40 = vpop.permute.xlu0 %1941 }
 0x711   : > { %v1946_v8 = vsel %vm1050_vm7, %v1942_v40, 0.0  ;;  %v1940_v41 = vpop.permute.xlu1 %1939 }
 0x712   : > { %1948 = vst [vmem:[#allocation5 + $0x8] sm:$0xff] %v1946_v8  ;;  %v1945_v31 = vsel %vm1050_vm7, %v1940_v41, 0.0 }
 0x713   : > { %1947 = vst [vmem:[#allocation5] sm:$0xff] %v1945_v31 }
 0x714 PF: > { %p2436_p6 = scmp.eq.s32.totalorder %s2608_s30, 1  ;;  %s2524_s19 = smov [#allocation5]  }
 0x715   : > { %s1955_s23 = sshll.u32 %s2524_s19, 4  ;;  %s1956_s23 = int_to_ptr.vmem [resolvable:$true] %s1955_s23 }
 0x716   : > { %s2475_s24 = scalar_lea.vmem %s1956_s23, 256  ;;  %p2482_p10 = scmp.lt.s32.totalorder %s1956_s23, %s1956_s23 }
 0x717   : > { %p2476_p7 = scmp.ne.s32.totalorder %s1956_s23, %s2475_s24  ;;  %p2483_p11 = scmp.lt.s32.totalorder %s2475_s24, %s2475_s24 }
 0x719   : > { %p2477_p8 = pnand %p2476_p7, %p2436_p6  ;;  %p2484_p12 = por %p2483_p11, %p2482_p10 }
 0x71b   : > { %p2478_p9 = pneg %p2477_p8 }
 0x71d   : > { %p2485_p13 = pnand %p2484_p12, %p2478_p9 }
 0x71f   : > { %2488 = shalt.err (!%p2485_p13)
}
 0x720   : > { %s2489_s28 = scalar_lea.hbm %s3330_s14, 256 }
 0x721   : > { %p2490_p0 = scmp.ne.s32.totalorder %s3330_s14, %s2489_s28  ;;  %p2495_p3 = scmp.lt.u32.totalorder %s2489_s28, %s3330_s14 }
 0x723   : > { %p2491_p1 = pnand %p2490_p0, %p2436_p6 }
 0x725   : > { %p2492_p2 = pneg %p2491_p1 }
 0x727   : > { %p2497_p4 = pnand %p2495_p3, %p2492_p2 }
 0x729   : > { %2500 = shalt.err (!%p2497_p4)
}
 0x72a   : > { %s2525_s18 = smov 128   ;;  %s2526_s20 = smov 8  }
 0x72b   : > { %2433 = dma.vmem_to_hbm [thread:$0]  (%p2436_p6), %s1956_s23, 256, %s3330_s14, [#allocation6], %s2525_s18, %s2525_s18, %s2526_s20  }
 0x72c   : > { %2506 = dma.done.wait (%p2436_p6), [#allocation6], 256  }
 0x72d   : > { %2508 = vsyncadd (%p2436_p6), [#allocation6], 4294967040 }
 0x72e PF: > { %s25_s29 = sadd.s32 1, %s2511_s29  }
 0x72f   : > { %p22_p5 = scmp.ge.s32.totalorder %s25_s29, 4  }
 0x731   :  { %24 = sbr.rel (!%p22_p5) target bundleno = 1 (0x1), region = 114 }
 0x738   :  { %1971 = vsyncpa [#allocation6], 1 }
 0x739   :  { %1973 = vsyncpa [#allocation6 + $0x1], 1 }

</bundles_post_ra>
